<compile_context>
chip_gen: v5e
topology: v5e:2x2
jax: 0.10.0
libtpu: 0.0.40
codegen_flags: <defaults>
</compile_context>

<pallas_src>
import jax
import jax.numpy as jnp
import numpy as np
from jax import lax
from jax.experimental import pallas as pl
from jax.experimental.pallas import tpu as pltpu

# ---------------- static network dimensions ----------------
H = W = 16                  # input spatial (so that 49*2*2 == 196 for fc1)
C_IN = 2                    # conv1 input channels
OC1, K1 = 32, 5             # conv1: 5x5, 2 -> 32
OH1 = H - K1 + 1            # 12   conv1 output spatial
PH1 = OH1 // 2              # 6    after 2x2 max-pool
OC2, K2 = 49, 2             # conv2: 2x2, 32 -> 49
OH2 = PH1 - K2 + 1          # 5    conv2 output spatial
PH2 = OH2 // 2              # 2    after 2x2 max-pool (floor)
N1 = OH1 * OC1              # 384  conv1 row width, cols = (ow, oc1)
NH1 = (OH1 - 1) * OC1       # 352  width-pair-maxed row, real value at even ow'
N2 = OH2 * OC2              # 245  conv2 row width, cols = (ow2, oc2)
NH2 = (OH2 - 1) * OC2       # 196  width-pair-maxed row, real value at even ow2'
NFC1, NFC2, NFC3 = 100, 10, 1
BAND_K = (K1 + 1) * C_IN * W   # 192: 6 input rows feed one pooled conv1 row pair
PAD_ROWS = 8                   # scratch row padding for +1 / +2 shifted reads


# ---------------- fused Pallas kernel (one block of samples per grid step) ----------------

def _wosn_kernel(band_ref, m1_ref, b1_ref, m2a_ref, m2b_ref, b2_ref,
                 g1a_ref, g1b_ref, bf1_ref, w23_ref, b23_ref,
                 o_ref, y1_ref, h1_ref, y2_ref, p2_ref):
    R = band_ref.shape[0]            # B_BLK * PH1 rows = (sample, pooled conv1 row)

    # ---- conv1 (5x5, 2->32): one banded matmul, K=192; both 2x2-pool row
    # parities are emitted side by side in the lane dim (cols = (p, ow, oc1)).
    y1_ref[...] = jnp.dot(band_ref[...], m1_ref[...],
                          preferred_element_type=jnp.float32) + b1_ref[...]   # (R, 768)

    # ---- 2x2 max-pool + relu (relu(max) == max(relu)).
    # Row-pair max = aligned lane-slice max over the parity halves;
    # column-pair max = 32-lane shifted slice max.
    rmax = jnp.maximum(y1_ref[:, 0:N1], y1_ref[:, N1:2 * N1])                 # (R, 384)
    h1 = jnp.maximum(jnp.maximum(rmax[:, 0:NH1], rmax[:, OC1:N1]), 0.0)       # (R, 352)
    h1_ref[0:R, :] = h1
    h1_ref[R:R + PAD_ROWS, :] = jnp.zeros((PAD_ROWS, NH1), jnp.float32)

    # ---- conv2 (2x2, 32->49): kernel-row shift = +1-row offset read of h1;
    # the pooled-column (even ow') selection is folded into m2a/m2b zero rows.
    y2 = (jnp.dot(h1_ref[pl.ds(0, R), :], m2a_ref[...],
                  preferred_element_type=jnp.float32)
          + jnp.dot(h1_ref[pl.ds(1, R), :], m2b_ref[...],
                    preferred_element_type=jnp.float32)
          + b2_ref[...])                                                      # (R, 245)
    y2_ref[0:R, :] = y2
    y2_ref[R:R + PAD_ROWS, :] = jnp.zeros((PAD_ROWS, N2), jnp.float32)

    # ---- 2x2 max-pool (floor) + relu: row-pair max via +1-row shifted read,
    # column-pair max via 49-lane shifted slice.  Valid pooled rows: j in {0, 2}.
    rmax2 = jnp.maximum(y2_ref[pl.ds(0, R), :], y2_ref[pl.ds(1, R), :])       # (R, 245)
    p2 = jnp.maximum(jnp.maximum(rmax2[:, 0:NH2], rmax2[:, OC2:N2]), 0.0)     # (R, 196)
    p2_ref[0:R, :] = p2
    p2_ref[R:R + PAD_ROWS, :] = jnp.zeros((PAD_ROWS, NH2), jnp.float32)

    # ---- fc1 + relu: torch NCHW flatten + pooled-row/col selection folded
    # into g1a/g1b (row j consumes pooled rows j and j+2; valid at j == 0).
    a = (jnp.dot(p2_ref[pl.ds(0, R), :], g1a_ref[...],
                 preferred_element_type=jnp.float32)
         + jnp.dot(p2_ref[pl.ds(2, R), :], g1b_ref[...],
                   preferred_element_type=jnp.float32)
         + bf1_ref[...])
    a = jnp.maximum(a, 0.0)                                                   # (R, 100)

    # ---- fc2∘fc3 composed (no nonlinearity between them in the module),
    # computed transposed ("NT" dot) so the per-sample scalars land lane-dense
    # along the batch axis; then relu + sigmoid.
    s = lax.dot_general(w23_ref[...], a, (((1,), (1,)), ((), ())),
                        preferred_element_type=jnp.float32)                   # (1, R)
    s = jnp.maximum(s + b23_ref[...], 0.0)
    o_ref[...] = 1.0 / (1.0 + jnp.exp(-s))


def _round_up(n, m):
    return ((n + m - 1) // m) * m


def wosn_forward(x, prep, *, batch_block=128):
    B = x.shape[0]
    blk = batch_block if B >= batch_block else _round_up(max(B, 1), 8)
    G = (B + blk - 1) // blk
    Bp = G * blk
    if Bp != B:
        x = jnp.pad(x, ((0, Bp - B), (0, 0), (0, 0), (0, 0)))

    # NCHW -> (Bp, H, C_IN*W); then the conv1 band: one row per pooled conv1
    # output row, holding the 6 input rows (2*ph .. 2*ph+5) it needs.
    xs = x.transpose(0, 2, 1, 3).reshape(Bp, H, C_IN * W)
    band = jnp.concatenate(
        [xs[:, rr:rr + 2 * PH1:2, :] for rr in range(K1 + 1)], axis=-1)   # (Bp, 6, 192)
    band = band.reshape(Bp * PH1, BAND_K)

    R = blk * PH1
    consts = [prep["m1"], prep["b1"], prep["m2a"], prep["m2b"], prep["b2"],
              prep["g1a"], prep["g1b"], prep["bf1"], prep["w23"], prep["b23"]]

    in_specs = [pl.BlockSpec((R, BAND_K), lambda i: (i, 0))]
    in_specs += [pl.BlockSpec(c.shape, lambda i: (0, 0)) for c in consts]

    flops = 2 * Bp * (PH1 * BAND_K * 2 * N1        # conv1 banded matmul
                      + 2 * PH1 * NH1 * N2         # conv2 (two banded matmuls)
                      + 2 * PH1 * NH2 * NFC1       # fc1   (two banded matmuls)
                      + PH1 * NFC1)                # fused fc2/fc3 head
    bytes_accessed = (band.size + sum(int(c.size) for c in consts) + G * R) * 4

    out = pl.pallas_call(
        _wosn_kernel,
        out_shape=jax.ShapeDtypeStruct((G, R), jnp.float32),
        grid=(G,),
        in_specs=in_specs,
        out_specs=pl.BlockSpec((1, R), lambda i: (i, 0)),
        scratch_shapes=[
            pltpu.VMEM((R, 2 * N1), jnp.float32),            # y1 (conv1 out, both parities)
            pltpu.VMEM((R + PAD_ROWS, NH1), jnp.float32),    # h1 (pooled conv1, +pad rows)
            pltpu.VMEM((R + PAD_ROWS, N2), jnp.float32),     # y2 (conv2 out, +pad rows)
            pltpu.VMEM((R + PAD_ROWS, NH2), jnp.float32),    # p2 (pooled conv2, +pad rows)
        ],
        compiler_params=pltpu.CompilerParams(
            dimension_semantics=("parallel",),
            vmem_limit_bytes=32 * 1024 * 1024),
        cost_estimate=pl.CostEstimate(
            flops=flops, transcendentals=Bp * PH1, bytes_accessed=bytes_accessed),
    )(band, *consts)

    # Valid sample scalars sit at lane (local_sample * PH1) of each output row.
    out = out.reshape(G, blk, PH1)[:, :, 0].reshape(Bp)[:B].reshape(B, 1)
    return None, out


# ---------------- one-time parameter preparation (host side) ----------------

def prepare_params(raw):
    w1 = np.asarray(raw["w1"], np.float32)    # (32, 2, 5, 5)  torch OIHW
    b1 = np.asarray(raw["b1"], np.float32)
    w2 = np.asarray(raw["w2"], np.float32)    # (49, 32, 2, 2)
    b2 = np.asarray(raw["b2"], np.float32)
    wf1 = np.asarray(raw["wf1"], np.float32)  # (100, 196) torch (out, in)
    bf1 = np.asarray(raw["bf1"], np.float32)
    wf2 = np.asarray(raw["wf2"], np.float32)  # (10, 100)
    bf2 = np.asarray(raw["bf2"], np.float32)
    wf3 = np.asarray(raw["wf3"], np.float32)  # (1, 10)
    bf3 = np.asarray(raw["bf3"], np.float32)  # (1,)

    # conv1 banded weights, both pool-row parities side by side:
    # m1[rr*32 + c*16 + (ow+kj), p*384 + ow*32 + oc] = w1[oc, c, rr-p, kj]
    m1 = np.zeros((BAND_K, 2 * N1), np.float32)
    for p in range(2):
        for ki in range(K1):
            rr = p + ki
            for c in range(C_IN):
                for kj in range(K1):
                    for ow in range(OH1):
                        r = rr * (C_IN * W) + c * W + ow + kj
                        m1[r, p * N1 + ow * OC1:p * N1 + (ow + 1) * OC1] = w1[:, c, ki, kj]

    # conv2 banded weights (one matrix per kernel row); h1 cols are (ow', oc1)
    # with real pooled values only at even ow' -> odd-ow' rows stay zero.
    m2a = np.zeros((NH1, N2), np.float32)
    m2b = np.zeros((NH1, N2), np.float32)
    for dj in range(K2):
        for c in range(OC1):
            for ow2 in range(OH2):
                r = 2 * (ow2 + dj) * OC1 + c
                m2a[r, ow2 * OC2:(ow2 + 1) * OC2] = w2[:, c, 0, dj]
                m2b[r, ow2 * OC2:(ow2 + 1) * OC2] = w2[:, c, 1, dj]

    # fc1 with the torch NCHW flatten (view(-1,196)) and the pooled-column
    # selection folded in; g1a consumes pooled row pi=0, g1b pooled row pi=1.
    g1a = np.zeros((NH2, NFC1), np.float32)
    g1b = np.zeros((NH2, NFC1), np.float32)
    for pj in range(PH2):
        for oc in range(OC2):
            r = 2 * pj * OC2 + oc
            g1a[r, :] = wf1[:, oc * (PH2 * PH2) + 0 * PH2 + pj]
            g1b[r, :] = wf1[:, oc * (PH2 * PH2) + 1 * PH2 + pj]

    # fc2 and fc3 compose exactly (no nonlinearity in between in the module).
    w23 = wf3 @ wf2                    # (1, 100)
    b23 = wf3 @ bf2 + bf3              # (1,)

    return dict(
        m1=jnp.asarray(m1),
        b1=jnp.asarray(np.tile(b1, 2 * OH1).reshape(1, 2 * N1)),
        m2a=jnp.asarray(m2a), m2b=jnp.asarray(m2b),
        b2=jnp.asarray(np.tile(b2, OH2).reshape(1, N2)),
        g1a=jnp.asarray(g1a), g1b=jnp.asarray(g1b),
        bf1=jnp.asarray(bf1.reshape(1, NFC1)),
        w23=jnp.asarray(w23.reshape(1, NFC1)),
        b23=jnp.asarray(b23.reshape(1, 1)),
    )


# ---------------- deterministic raw (torch-layout) parameters ----------------

def init_raw_params(key):
    ks = jax.random.split(key, 10)

    def u(k, shape, scale):
        return jax.random.uniform(k, shape, jnp.float32, -1.0, 1.0) * scale

    return dict(
        w1=u(ks[0], (OC1, C_IN, K1, K1), 0.2), b1=u(ks[1], (OC1,), 0.2),
        w2=u(ks[2], (OC2, OC1, K2, K2), 0.1), b2=u(ks[3], (OC2,), 0.1),
        wf1=u(ks[4], (NFC1, OC2 * PH2 * PH2), 0.07), bf1=u(ks[5], (NFC1,), 0.07),
        wf2=u(ks[6], (NFC2, NFC1), 0.1), bf2=u(ks[7], (NFC2,), 0.1),
        wf3=u(ks[8], (NFC3, NFC2), 0.3), bf3=u(ks[9], (NFC3,), 0.3),
    )


# ---------------- pure-JAX reference (mirrors torch semantics) ----------------

def reference_forward(x, raw):
    dn = ("NCHW", "OIHW", "NCHW")
    y = lax.conv_general_dilated(x, raw["w1"], (1, 1), "VALID", dimension_numbers=dn)
    y = y + raw["b1"][None, :, None, None]
    y = lax.reduce_window(y, -jnp.inf, lax.max, (1, 1, 2, 2), (1, 1, 2, 2), "VALID")
    y = jnp.maximum(y, 0.0)
    y = lax.conv_general_dilated(y, raw["w2"], (1, 1), "VALID", dimension_numbers=dn)
    y = y + raw["b2"][None, :, None, None]
    y = lax.reduce_window(y, -jnp.inf, lax.max, (1, 1, 2, 2), (1, 1, 2, 2), "VALID")
    y = jnp.maximum(y, 0.0)
    flat = y.reshape(y.shape[0], -1)
    h = jnp.maximum(flat @ raw["wf1"].T + raw["bf1"], 0.0)
    h = h @ raw["wf2"].T + raw["bf2"]
    h = h @ raw["wf3"].T + raw["bf3"]
    h = jnp.maximum(h, 0.0)
    return jax.nn.sigmoid(h)


if __name__ == "__main__":
    key = jax.random.PRNGKey(0)
    kx, kp = jax.random.split(key)
    raw = init_raw_params(kp)
    prep = prepare_params(raw)
    fwd = jax.jit(wosn_forward)

    # NCHW input: 2 channels, 16x16 spatial -> flatten gives exactly 196 features
    x = jax.random.normal(kx, (2, C_IN, H, W), jnp.float32)
    _, out = fwd(x, prep)
    out = jax.block_until_ready(out)
    ref = reference_forward(x, raw)
    np.testing.assert_allclose(np.asarray(out), np.asarray(ref), rtol=1e-4, atol=1e-5)

    # Also exercise the batched path: multi-step grid + batch padding +
    # lane-dense (1, 768) output rows.
    xb = jax.random.normal(jax.random.PRNGKey(1), (300, C_IN, H, W), jnp.float32)
    _, outb = fwd(xb, prep)
    outb = jax.block_until_ready(outb)
    refb = reference_forward(xb, raw)
    np.testing.assert_allclose(np.asarray(outb), np.asarray(refb), rtol=1e-4, atol=1e-5)

    print("KERNEL_OK")
</pallas_src>

<mosaic_0001>
module attributes {stable_mosaic.version = 11 : i64} {
  func.func @_wosn_kernel(%arg0: i32, %arg1: memref<48x192xf32, #tpu.memory_space<vmem>>, %arg2: memref<192x768xf32, #tpu.memory_space<vmem>>, %arg3: memref<1x768xf32, #tpu.memory_space<vmem>>, %arg4: memref<352x245xf32, #tpu.memory_space<vmem>>, %arg5: memref<352x245xf32, #tpu.memory_space<vmem>>, %arg6: memref<1x245xf32, #tpu.memory_space<vmem>>, %arg7: memref<196x100xf32, #tpu.memory_space<vmem>>, %arg8: memref<196x100xf32, #tpu.memory_space<vmem>>, %arg9: memref<1x100xf32, #tpu.memory_space<vmem>>, %arg10: memref<1x100xf32, #tpu.memory_space<vmem>>, %arg11: memref<1x1xf32, #tpu.memory_space<vmem>>, %arg12: memref<1x48xf32, #tpu.memory_space<vmem>>, %arg13: memref<48x768xf32, #tpu.memory_space<vmem>>, %arg14: memref<56x352xf32, #tpu.memory_space<vmem>>, %arg15: memref<56x245xf32, #tpu.memory_space<vmem>>, %arg16: memref<56x196xf32, #tpu.memory_space<vmem>>) attributes {dimension_semantics = [#tpu.dimension_semantics<parallel>], iteration_bounds = array<i64: 1>, scalar_prefetch = 0 : i64, scratch_operands = 4 : i64, tpu.core_type = #tpu.core_type<tc>, window_params = [{transform_indices = @transform_0, window_bounds = array<i64: 48, 192>}, {pipeline_mode = #tpu.pipeline_mode<synchronous>, transform_indices = @transform_1, window_bounds = array<i64: 192, 768>}, {pipeline_mode = #tpu.pipeline_mode<synchronous>, transform_indices = @transform_2, window_bounds = array<i64: 1, 768>}, {pipeline_mode = #tpu.pipeline_mode<synchronous>, transform_indices = @transform_3, window_bounds = array<i64: 352, 245>}, {pipeline_mode = #tpu.pipeline_mode<synchronous>, transform_indices = @transform_4, window_bounds = array<i64: 352, 245>}, {pipeline_mode = #tpu.pipeline_mode<synchronous>, transform_indices = @transform_5, window_bounds = array<i64: 1, 245>}, {pipeline_mode = #tpu.pipeline_mode<synchronous>, transform_indices = @transform_6, window_bounds = array<i64: 196, 100>}, {pipeline_mode = #tpu.pipeline_mode<synchronous>, transform_indices = @transform_7, window_bounds = array<i64: 196, 100>}, {pipeline_mode = #tpu.pipeline_mode<synchronous>, transform_indices = @transform_8, window_bounds = array<i64: 1, 100>}, {pipeline_mode = #tpu.pipeline_mode<synchronous>, transform_indices = @transform_9, window_bounds = array<i64: 1, 100>}, {pipeline_mode = #tpu.pipeline_mode<synchronous>, transform_indices = @transform_10, window_bounds = array<i64: 1, 1>}, {transform_indices = @transform_11, window_bounds = array<i64: 1, 48>}]} {
    %c0 = arith.constant 0 : index
    %c0_0 = arith.constant 0 : index
    %0 = vector.load %arg1[%c0, %c0_0] : memref<48x192xf32, #tpu.memory_space<vmem>>, vector<48x192xf32>
    %c0_1 = arith.constant 0 : index
    %c0_2 = arith.constant 0 : index
    %1 = vector.load %arg2[%c0_1, %c0_2] : memref<192x768xf32, #tpu.memory_space<vmem>>, vector<192x768xf32>
    %cst = arith.constant dense<0.000000e+00> : vector<48x768xf32>
    %2 = tpu.matmul %0, %1, %cst {dimension_numbers = #tpu.dot_dimension_numbers<[1], [0], [0], [1], [0, 0, 1, 1], [], []>} : vector<48x192xf32>, vector<192x768xf32>, vector<48x768xf32> -> vector<48x768xf32>
    %c0_3 = arith.constant 0 : index
    %c0_4 = arith.constant 0 : index
    %3 = vector.load %arg3[%c0_3, %c0_4] : memref<1x768xf32, #tpu.memory_space<vmem>>, vector<1x768xf32>
    %4 = vector.broadcast %3 : vector<1x768xf32> to vector<48x768xf32>
    %5 = arith.addf %2, %4 : vector<48x768xf32>
    %c0_5 = arith.constant 0 : index
    %c0_6 = arith.constant 0 : index
    %6 = vector.load %arg13[%c0_5, %c0_6] : memref<48x768xf32, #tpu.memory_space<vmem>>, vector<48x768xf32>
    tpu.vector_store %arg13[%c0_5, %c0_6], %5 {strides = array<i32>} : memref<48x768xf32, #tpu.memory_space<vmem>>, vector<48x768xf32>,
    %c0_7 = arith.constant 0 : index
    %c0_8 = arith.constant 0 : index
    %7 = vector.load %arg13[%c0_7, %c0_8] : memref<48x768xf32, #tpu.memory_space<vmem>>, vector<48x384xf32>
    %c0_9 = arith.constant 0 : index
    %c384 = arith.constant 384 : index
    %8 = vector.load %arg13[%c0_9, %c384] : memref<48x768xf32, #tpu.memory_space<vmem>>, vector<48x384xf32>
    %9 = arith.maximumf %7, %8 : vector<48x384xf32>
    %10 = vector.extract_strided_slice %9 {offsets = [0, 0], sizes = [48, 352], strides = [1, 1]} : vector<48x384xf32> to vector<48x352xf32>
    %11 = vector.extract_strided_slice %9 {offsets = [0, 32], sizes = [48, 352], strides = [1, 1]} : vector<48x384xf32> to vector<48x352xf32>
    %12 = arith.maximumf %10, %11 : vector<48x352xf32>
    %cst_10 = arith.constant 0.000000e+00 : f32
    %13 = vector.broadcast %cst_10 : f32 to vector<48x352xf32>
    %14 = arith.maximumf %12, %13 : vector<48x352xf32>
    %c0_11 = arith.constant 0 : index
    %c0_12 = arith.constant 0 : index
    %15 = vector.load %arg14[%c0_11, %c0_12] : memref<56x352xf32, #tpu.memory_space<vmem>>, vector<48x352xf32>
    tpu.vector_store %arg14[%c0_11, %c0_12], %14 {strides = array<i32>} : memref<56x352xf32, #tpu.memory_space<vmem>>, vector<48x352xf32>,
    %cst_13 = arith.constant 0.000000e+00 : f32
    %16 = vector.broadcast %cst_13 : f32 to vector<8x352xf32>
    %c48 = arith.constant 48 : index
    %c0_14 = arith.constant 0 : index
    %17 = vector.load %arg14[%c48, %c0_14] : memref<56x352xf32, #tpu.memory_space<vmem>>, vector<8x352xf32>
    tpu.vector_store %arg14[%c48, %c0_14], %16 {strides = array<i32>} : memref<56x352xf32, #tpu.memory_space<vmem>>, vector<8x352xf32>,
    %c0_15 = arith.constant 0 : index
    %c0_16 = arith.constant 0 : index
    %18 = vector.load %arg14[%c0_15, %c0_16] : memref<56x352xf32, #tpu.memory_space<vmem>>, vector<48x352xf32>
    %c0_17 = arith.constant 0 : index
    %c0_18 = arith.constant 0 : index
    %19 = vector.load %arg4[%c0_17, %c0_18] : memref<352x245xf32, #tpu.memory_space<vmem>>, vector<352x245xf32>
    %cst_19 = arith.constant dense<0.000000e+00> : vector<48x245xf32>
    %20 = tpu.matmul %18, %19, %cst_19 {dimension_numbers = #tpu.dot_dimension_numbers<[1], [0], [0], [1], [0, 0, 1, 1], [], []>} : vector<48x352xf32>, vector<352x245xf32>, vector<48x245xf32> -> vector<48x245xf32>
    %c1 = arith.constant 1 : index
    %c0_20 = arith.constant 0 : index
    %21 = vector.load %arg14[%c1, %c0_20] : memref<56x352xf32, #tpu.memory_space<vmem>>, vector<48x352xf32>
    %c0_21 = arith.constant 0 : index
    %c0_22 = arith.constant 0 : index
    %22 = vector.load %arg5[%c0_21, %c0_22] : memref<352x245xf32, #tpu.memory_space<vmem>>, vector<352x245xf32>
    %cst_23 = arith.constant dense<0.000000e+00> : vector<48x245xf32>
    %23 = tpu.matmul %21, %22, %cst_23 {dimension_numbers = #tpu.dot_dimension_numbers<[1], [0], [0], [1], [0, 0, 1, 1], [], []>} : vector<48x352xf32>, vector<352x245xf32>, vector<48x245xf32> -> vector<48x245xf32>
    %24 = arith.addf %20, %23 : vector<48x245xf32>
    %c0_24 = arith.constant 0 : index
    %c0_25 = arith.constant 0 : index
    %25 = vector.load %arg6[%c0_24, %c0_25] : memref<1x245xf32, #tpu.memory_space<vmem>>, vector<1x245xf32>
    %26 = vector.broadcast %25 : vector<1x245xf32> to vector<48x245xf32>
    %27 = arith.addf %24, %26 : vector<48x245xf32>
    %c0_26 = arith.constant 0 : index
    %c0_27 = arith.constant 0 : index
    %28 = vector.load %arg15[%c0_26, %c0_27] : memref<56x245xf32, #tpu.memory_space<vmem>>, vector<48x245xf32>
    tpu.vector_store %arg15[%c0_26, %c0_27], %27 {strides = array<i32>} : memref<56x245xf32, #tpu.memory_space<vmem>>, vector<48x245xf32>,
    %cst_28 = arith.constant 0.000000e+00 : f32
    %29 = vector.broadcast %cst_28 : f32 to vector<8x245xf32>
    %c48_29 = arith.constant 48 : index
    %c0_30 = arith.constant 0 : index
    %30 = vector.load %arg15[%c48_29, %c0_30] : memref<56x245xf32, #tpu.memory_space<vmem>>, vector<8x245xf32>
    tpu.vector_store %arg15[%c48_29, %c0_30], %29 {strides = array<i32>} : memref<56x245xf32, #tpu.memory_space<vmem>>, vector<8x245xf32>,
    %c0_31 = arith.constant 0 : index
    %c0_32 = arith.constant 0 : index
    %31 = vector.load %arg15[%c0_31, %c0_32] : memref<56x245xf32, #tpu.memory_space<vmem>>, vector<48x245xf32>
    %c1_33 = arith.constant 1 : index
    %c0_34 = arith.constant 0 : index
    %32 = vector.load %arg15[%c1_33, %c0_34] : memref<56x245xf32, #tpu.memory_space<vmem>>, vector<48x245xf32>
    %33 = arith.maximumf %31, %32 : vector<48x245xf32>
    %34 = vector.extract_strided_slice %33 {offsets = [0, 0], sizes = [48, 196], strides = [1, 1]} : vector<48x245xf32> to vector<48x196xf32>
    %35 = vector.extract_strided_slice %33 {offsets = [0, 49], sizes = [48, 196], strides = [1, 1]} : vector<48x245xf32> to vector<48x196xf32>
    %36 = arith.maximumf %34, %35 : vector<48x196xf32>
    %cst_35 = arith.constant 0.000000e+00 : f32
    %37 = vector.broadcast %cst_35 : f32 to vector<48x196xf32>
    %38 = arith.maximumf %36, %37 : vector<48x196xf32>
    %c0_36 = arith.constant 0 : index
    %c0_37 = arith.constant 0 : index
    %39 = vector.load %arg16[%c0_36, %c0_37] : memref<56x196xf32, #tpu.memory_space<vmem>>, vector<48x196xf32>
    tpu.vector_store %arg16[%c0_36, %c0_37], %38 {strides = array<i32>} : memref<56x196xf32, #tpu.memory_space<vmem>>, vector<48x196xf32>,
    %cst_38 = arith.constant 0.000000e+00 : f32
    %40 = vector.broadcast %cst_38 : f32 to vector<8x196xf32>
    %c48_39 = arith.constant 48 : index
    %c0_40 = arith.constant 0 : index
    %41 = vector.load %arg16[%c48_39, %c0_40] : memref<56x196xf32, #tpu.memory_space<vmem>>, vector<8x196xf32>
    tpu.vector_store %arg16[%c48_39, %c0_40], %40 {strides = array<i32>} : memref<56x196xf32, #tpu.memory_space<vmem>>, vector<8x196xf32>,
    %c0_41 = arith.constant 0 : index
    %c0_42 = arith.constant 0 : index
    %42 = vector.load %arg16[%c0_41, %c0_42] : memref<56x196xf32, #tpu.memory_space<vmem>>, vector<48x196xf32>
    %c0_43 = arith.constant 0 : index
    %c0_44 = arith.constant 0 : index
    %43 = vector.load %arg7[%c0_43, %c0_44] : memref<196x100xf32, #tpu.memory_space<vmem>>, vector<196x100xf32>
    %cst_45 = arith.constant dense<0.000000e+00> : vector<48x100xf32>
    %44 = tpu.matmul %42, %43, %cst_45 {dimension_numbers = #tpu.dot_dimension_numbers<[1], [0], [0], [1], [0, 0, 1, 1], [], []>} : vector<48x196xf32>, vector<196x100xf32>, vector<48x100xf32> -> vector<48x100xf32>
    %c2 = arith.constant 2 : index
    %c0_46 = arith.constant 0 : index
    %45 = vector.load %arg16[%c2, %c0_46] : memref<56x196xf32, #tpu.memory_space<vmem>>, vector<48x196xf32>
    %c0_47 = arith.constant 0 : index
    %c0_48 = arith.constant 0 : index
    %46 = vector.load %arg8[%c0_47, %c0_48] : memref<196x100xf32, #tpu.memory_space<vmem>>, vector<196x100xf32>
    %cst_49 = arith.constant dense<0.000000e+00> : vector<48x100xf32>
    %47 = tpu.matmul %45, %46, %cst_49 {dimension_numbers = #tpu.dot_dimension_numbers<[1], [0], [0], [1], [0, 0, 1, 1], [], []>} : vector<48x196xf32>, vector<196x100xf32>, vector<48x100xf32> -> vector<48x100xf32>
    %48 = arith.addf %44, %47 : vector<48x100xf32>
    %c0_50 = arith.constant 0 : index
    %c0_51 = arith.constant 0 : index
    %49 = vector.load %arg9[%c0_50, %c0_51] : memref<1x100xf32, #tpu.memory_space<vmem>>, vector<1x100xf32>
    %50 = vector.broadcast %49 : vector<1x100xf32> to vector<48x100xf32>
    %51 = arith.addf %48, %50 : vector<48x100xf32>
    %cst_52 = arith.constant 0.000000e+00 : f32
    %52 = vector.broadcast %cst_52 : f32 to vector<48x100xf32>
    %53 = arith.maximumf %51, %52 : vector<48x100xf32>
    %c0_53 = arith.constant 0 : index
    %c0_54 = arith.constant 0 : index
    %54 = vector.load %arg10[%c0_53, %c0_54] : memref<1x100xf32, #tpu.memory_space<vmem>>, vector<1x100xf32>
    %cst_55 = arith.constant dense<0.000000e+00> : vector<1x48xf32>
    %55 = tpu.matmul %54, %53, %cst_55 {dimension_numbers = #tpu.dot_dimension_numbers<[1], [1], [0], [0], [0, 0, 1, 0], [], []>} : vector<1x100xf32>, vector<48x100xf32>, vector<1x48xf32> -> vector<1x48xf32>
    %c0_56 = arith.constant 0 : index
    %c0_57 = arith.constant 0 : index
    %56 = vector.load %arg11[%c0_56, %c0_57] : memref<1x1xf32, #tpu.memory_space<vmem>>, vector<1x1xf32>
    %57 = vector.broadcast %56 : vector<1x1xf32> to vector<1x48xf32>
    %58 = arith.addf %55, %57 : vector<1x48xf32>
    %cst_58 = arith.constant 0.000000e+00 : f32
    %59 = vector.broadcast %cst_58 : f32 to vector<1x48xf32>
    %60 = arith.maximumf %58, %59 : vector<1x48xf32>
    %cst_59 = arith.constant 0.000000e+00 : f32
    %61 = vector.broadcast %cst_59 : f32 to vector<1x48xf32>
    %62 = arith.subf %61, %60 : vector<1x48xf32>
    %63 = math.exp %62 : vector<1x48xf32>
    %cst_60 = arith.constant 1.000000e+00 : f32
    %64 = vector.broadcast %cst_60 : f32 to vector<1x48xf32>
    %65 = arith.addf %64, %63 : vector<1x48xf32>
    %cst_61 = arith.constant 1.000000e+00 : f32
    %66 = vector.broadcast %cst_61 : f32 to vector<1x48xf32>
    %67 = arith.divf %66, %65 : vector<1x48xf32>
    %c0_62 = arith.constant 0 : index
    %c0_63 = arith.constant 0 : index
    %68 = vector.load %arg12[%c0_62, %c0_63] : memref<1x48xf32, #tpu.memory_space<vmem>>, vector<1x48xf32>
    tpu.vector_store %arg12[%c0_62, %c0_63], %67 {strides = array<i32>} : memref<1x48xf32, #tpu.memory_space<vmem>>, vector<1x48xf32>,
    return
  }
  func.func @transform_0(%arg0: i32) -> (i32, i32) {
    %c0_i32 = arith.constant 0 : i32
    %c0_i32_0 = arith.constant 0 : i32
    return %arg0, %c0_i32 : i32, i32
  }
  func.func @transform_1(%arg0: i32) -> (i32, i32) {
    %c0_i32 = arith.constant 0 : i32
    %c0_i32_0 = arith.constant 0 : i32
    %c0_i32_1 = arith.constant 0 : i32
    return %c0_i32, %c0_i32_0 : i32, i32
  }
  func.func @transform_2(%arg0: i32) -> (i32, i32) {
    %c0_i32 = arith.constant 0 : i32
    %c0_i32_0 = arith.constant 0 : i32
    %c0_i32_1 = arith.constant 0 : i32
    return %c0_i32, %c0_i32_0 : i32, i32
  }
  func.func @transform_3(%arg0: i32) -> (i32, i32) {
    %c0_i32 = arith.constant 0 : i32
    %c0_i32_0 = arith.constant 0 : i32
    %c0_i32_1 = arith.constant 0 : i32
    return %c0_i32, %c0_i32_0 : i32, i32
  }
  func.func @transform_4(%arg0: i32) -> (i32, i32) {
    %c0_i32 = arith.constant 0 : i32
    %c0_i32_0 = arith.constant 0 : i32
    %c0_i32_1 = arith.constant 0 : i32
    return %c0_i32, %c0_i32_0 : i32, i32
  }
  func.func @transform_5(%arg0: i32) -> (i32, i32) {
    %c0_i32 = arith.constant 0 : i32
    %c0_i32_0 = arith.constant 0 : i32
    %c0_i32_1 = arith.constant 0 : i32
    return %c0_i32, %c0_i32_0 : i32, i32
  }
  func.func @transform_6(%arg0: i32) -> (i32, i32) {
    %c0_i32 = arith.constant 0 : i32
    %c0_i32_0 = arith.constant 0 : i32
    %c0_i32_1 = arith.constant 0 : i32
    return %c0_i32, %c0_i32_0 : i32, i32
  }
  func.func @transform_7(%arg0: i32) -> (i32, i32) {
    %c0_i32 = arith.constant 0 : i32
    %c0_i32_0 = arith.constant 0 : i32
    %c0_i32_1 = arith.constant 0 : i32
    return %c0_i32, %c0_i32_0 : i32, i32
  }
  func.func @transform_8(%arg0: i32) -> (i32, i32) {
    %c0_i32 = arith.constant 0 : i32
    %c0_i32_0 = arith.constant 0 : i32
    %c0_i32_1 = arith.constant 0 : i32
    return %c0_i32, %c0_i32_0 : i32, i32
  }
  func.func @transform_9(%arg0: i32) -> (i32, i32) {
    %c0_i32 = arith.constant 0 : i32
    %c0_i32_0 = arith.constant 0 : i32
    %c0_i32_1 = arith.constant 0 : i32
    return %c0_i32, %c0_i32_0 : i32, i32
  }
  func.func @transform_10(%arg0: i32) -> (i32, i32) {
    %c0_i32 = arith.constant 0 : i32
    %c0_i32_0 = arith.constant 0 : i32
    %c0_i32_1 = arith.constant 0 : i32
    return %c0_i32, %c0_i32_0 : i32, i32
  }
  func.func @transform_11(%arg0: i32) -> (i32, i32) {
    %c0_i32 = arith.constant 0 : i32
    %c0_i32_0 = arith.constant 0 : i32
    return %arg0, %c0_i32 : i32, i32
  }
}

</mosaic_0001>

<bundles_post_ra>
// kernel: wosn_forward.1
= control target key start
LH: loop header
LB: loop body
LE: loop exit
PB: predicated region body
PF: predicated region fallthrough
CT: control target
= control target key end

     0   :  { %s4206_s0 = inlined_call_operand.vmem [shape: f32[48,192], index: 0, kind: input, shape index: {}]   ;;  %s4207_s1 = inlined_call_operand.vmem [shape: f32[192,768], index: 1, kind: input, shape index: {}]   ;;  %s4208_s2 = inlined_call_operand.vmem [shape: f32[1,768], index: 2, kind: input, shape index: {}]   ;;  %s4209_s3 = inlined_call_operand.vmem [shape: f32[352,245], index: 3, kind: input, shape index: {}]   ;;  %s4210_s4 = inlined_call_operand.vmem [shape: f32[352,245], index: 4, kind: input, shape index: {}]   ;;  %s4211_s5 = inlined_call_operand.vmem [shape: f32[1,245], index: 5, kind: input, shape index: {}]   ;;  %s4212_s6 = inlined_call_operand.hbm [shape: f32[196,100], index: 6, kind: input, shape index: {}]   ;;  %s4213_s7 = inlined_call_operand.hbm [shape: f32[196,100], index: 7, kind: input, shape index: {}]   ;;  %s4214_s8 = inlined_call_operand.vmem [shape: f32[1,100], index: 8, kind: input, shape index: {}]   ;;  %s4215_s9 = inlined_call_operand.vmem [shape: f32[1,100], index: 9, kind: input, shape index: {}]   ;;  %s4216_s10 = inlined_call_operand.<no memory space> [shape: f32[1,1], index: 10, kind: input, shape index: {}]   ;;  %s4217_s11 = inlined_call_operand.vmem [shape: f32[1,48], index: 11, kind: output, shape index: {}]  }
   0x1   :  { %v16_v0 = vstv %s4216_s10 }
   0x2   :  { %17 = vst [vmem:[#allocation6] sm:$0x1] %v16_v0 }
   0x3   :  { %18 = vsyncpa [#allocation8], 0  ;;  %s36_s21 = sshll.u32 %s4212_s6, 4  ;;  %s37_s21 = int_to_ptr.hbm [resolvable:$true] %s36_s21 }
   0x4   :  { %19 = vsyncpa [#allocation10], 0  ;;  %s2365_s22 = smov [#allocation7]   ;;  %s49_s26 = sshll.u32 %s4213_s7, 4  ;;  %s50_s26 = int_to_ptr.hbm [resolvable:$true] %s49_s26 }
   0x5   :  { %s38_s23 = sshll.u32 %s2365_s22, 4  ;;  %s2366_s27 = smov 128   ;;  %s39_s23 = int_to_ptr.vmem [resolvable:$true] %s38_s23 }
   0x6   :  { %s2367_s28 = smov 8   ;;  %s2368_s10 = smov [#allocation9]  }
   0x7   :  { %44 = dma.hbm_to_vmem [thread:$0]  %s37_s21, 3200, %s39_s23, [#allocation8], %s2366_s27, %s2366_s27, %s2367_s28  }
   0x8   :  { %s51_s29 = sshll.u32 %s2368_s10, 4  ;;  %s52_s29 = int_to_ptr.vmem [resolvable:$true] %s51_s29 }
   0x9   :  { %57 = dma.hbm_to_vmem [thread:$0]  %s50_s26, 3200, %s52_s29, [#allocation10], %s2366_s27, %s2366_s27, %s2367_s28  }
   0xa   :  { %2361 = dma.done.wait [#allocation8], 3200  }
   0xb   :  { %2362 = vsyncadd [#allocation8], 4294964096 }
   0xc   :  { %2363 = dma.done.wait [#allocation10], 3200  }
   0xd   :  { %2364 = vsyncadd [#allocation10], 4294964096  ;;  %v174_v1 = vld [vmem:[%s4207_s1 + $0x2d0] sm:$0xff]  ;;  %v175_v2 = vld [vmem:[%s4207_s1 + $0x2d8] sm:$0xff]  ;;  %vm242_vm0 = vcmask 523264   ;;  %vm825_vm1 = vcmask 785408  }
   0xe   :  { %v223_v3 = vld [vmem:[%s4207_s1 + $0x458] sm:$0xff]  ;;  %261 = vmatpush.msra.mxu0 %v174_v1  ;;  %331 = vmatpush.msra.mxu2 %v175_v2  ;;  %v168_v4 = vld [vmem:[%s4207_s1 + $0x2a0] sm:$0xff]  ;;  %v169_v5 = vld [vmem:[%s4207_s1 + $0x2a8] sm:$0xff]  ;;  %vm1134_vm2 = vcmask 1046528   ;;  %vm1650_vm3 = vcmask 957440   ;;  %vm1824_vm4 = vcmask 556032  }
   0xf   :  { %v217_v6 = vld [vmem:[%s4207_s1 + $0x428] sm:$0xff]  ;;  %374 = vmatpush.msra.mxu3 %v223_v3  ;;  %v162_v7 = vld [vmem:[%s4207_s1 + $0x270] sm:$0xff]  ;;  %v163_v9 = vld [vmem:[%s4207_s1 + $0x278] sm:$0xff]  ;;  %vm1963_vm5 = vcmask 1043456   ;;  %vm1780_vm6 = vcmask 646144   ;;  %vm1918_vm7 = vcmask 1045504  }
  0x10   :  { %v222_v8 = vld [vmem:[%s4207_s1 + $0x450] sm:$0xff]  ;;  %262 = vmatpush.msra.mxu0 %v168_v4  ;;  %332 = vmatpush.msra.mxu2 %v169_v5  ;;  %v211_v10 = vld [vmem:[%s4207_s1 + $0x3f8] sm:$0xff]  ;;  %v216_v11 = vld [vmem:[%s4207_s1 + $0x420] sm:$0xff]  ;;  %vm2147_vm8 = vcmask 818176   ;;  %vm2209_vm12 = vcmask 385024  }
  0x11   :  { %375 = vmatpush.msra.mxu3 %v217_v6  ;;  %304 = vmatpush.msra.mxu1 %v222_v8  ;;  %v156_v12 = vld [vmem:[%s4207_s1 + $0x240] sm:$0xff]  ;;  %v157_v13 = vld [vmem:[%s4207_s1 + $0x248] sm:$0xff]  ;;  %v210_v15 = vld [vmem:[%s4207_s1 + $0x3f0] sm:$0xff] }
  0x12   :  { %263 = vmatpush.msra.mxu0 %v162_v7  ;;  %333 = vmatpush.msra.mxu2 %v163_v9  ;;  %v205_v14 = vld [vmem:[%s4207_s1 + $0x3c8] sm:$0xff]  ;;  %v150_v16 = vld [vmem:[%s4207_s1 + $0x210] sm:$0xff]  ;;  %v151_v17 = vld [vmem:[%s4207_s1 + $0x218] sm:$0xff] }
  0x13   :  { %376 = vmatpush.msra.mxu3 %v211_v10  ;;  %305 = vmatpush.msra.mxu1 %v216_v11  ;;  %v199_v18 = vld [vmem:[%s4207_s1 + $0x398] sm:$0xff]  ;;  %v204_v19 = vld [vmem:[%s4207_s1 + $0x3c0] sm:$0xff]  ;;  %v145_v21 = vld [vmem:[%s4207_s1 + $0x1e8] sm:$0xff] }
  0x14   :  { %264 = vmatpush.msra.mxu0 %v156_v12  ;;  %334 = vmatpush.msra.mxu2 %v157_v13  ;;  %v144_v20 = vld [vmem:[%s4207_s1 + $0x1e0] sm:$0xff]  ;;  %v193_v22 = vld [vmem:[%s4207_s1 + $0x368] sm:$0xff]  ;;  %v198_v23 = vld [vmem:[%s4207_s1 + $0x390] sm:$0xff] }
  0x15   :  { %377 = vmatpush.msra.mxu3 %v205_v14  ;;  %306 = vmatpush.msra.mxu1 %v210_v15  ;;  %v138_v24 = vld [vmem:[%s4207_s1 + $0x1b0] sm:$0xff]  ;;  %v139_v25 = vld [vmem:[%s4207_s1 + $0x1b8] sm:$0xff]  ;;  %v192_v27 = vld [vmem:[%s4207_s1 + $0x360] sm:$0xff] }
  0x16   :  { %265 = vmatpush.msra.mxu0 %v150_v16  ;;  %335 = vmatpush.msra.mxu2 %v151_v17  ;;  %v187_v26 = vld [vmem:[%s4207_s1 + $0x338] sm:$0xff]  ;;  %v132_v28 = vld [vmem:[%s4207_s1 + $0x180] sm:$0xff]  ;;  %v133_v29 = vld [vmem:[%s4207_s1 + $0x188] sm:$0xff] }
  0x17   :  { %378 = vmatpush.msra.mxu3 %v199_v18  ;;  %307 = vmatpush.msra.mxu1 %v204_v19  ;;  %v181_v30 = vld [vmem:[%s4207_s1 + $0x308] sm:$0xff]  ;;  %v186_v31 = vld [vmem:[%s4207_s1 + $0x330] sm:$0xff]  ;;  %v127_v34 = vld [vmem:[%s4207_s1 + $0x158] sm:$0xff] }
  0x18   :  { %266 = vmatpush.msra.mxu0 %v144_v20  ;;  %336 = vmatpush.msra.mxu2 %v145_v21  ;;  %v2538_v32 = vld [vmem:[%s4206_s0 + $0x8] sm:$0xff]  ;;  %v126_v33 = vld [vmem:[%s4207_s1 + $0x150] sm:$0xff]  ;;  %v180_v35 = vld [vmem:[%s4207_s1 + $0x300] sm:$0xff] }
  0x19   :  { %379 = vmatpush.msra.mxu3 %v193_v22  ;;  %308 = vmatpush.msra.mxu1 %v198_v23  ;;  %v120_v36 = vld [vmem:[%s4207_s1 + $0x120] sm:$0xff]  ;;  %v121_v37 = vld [vmem:[%s4207_s1 + $0x128] sm:$0xff]  ;;  %v114_v39 = vld [vmem:[%s4207_s1 + $0xf0] sm:$0xff] }
  0x1a   :  { %267 = vmatpush.msra.mxu0 %v138_v24  ;;  %337 = vmatpush.msra.mxu2 %v139_v25  ;;  %v176_v38 = vld [vmem:[%s4207_s1 + $0x2e0] sm:$0xff]  ;;  %v115_v40 = vld [vmem:[%s4207_s1 + $0xf8] sm:$0xff]  ;;  %v170_v41 = vld [vmem:[%s4207_s1 + $0x2b0] sm:$0xff] }
  0x1b   :  { %380 = vmatpush.msra.mxu3 %v187_v26  ;;  %309 = vmatpush.msra.mxu1 %v192_v27  ;;  %v108_v42 = vld [vmem:[%s4207_s1 + $0xc0] sm:$0xff]  ;;  %v109_v43 = vld [vmem:[%s4207_s1 + $0xc8] sm:$0xff]  ;;  %v2586_v46 = vld [vmem:[%s4206_s0 + $0x18] sm:$0xff] }
  0x1c   :  { %268 = vmatpush.msra.mxu0 %v132_v28  ;;  %338 = vmatpush.msra.mxu2 %v133_v29  ;;  %v164_v44 = vld [vmem:[%s4207_s1 + $0x280] sm:$0xff]  ;;  %v102_v47 = vld [vmem:[%s4207_s1 + $0x90] sm:$0xff]  ;;  %v103_v48 = vld [vmem:[%s4207_s1 + $0x98] sm:$0xff] }
  0x1d   :  { %381 = vmatpush.msra.mxu3 %v181_v30  ;;  %310 = vmatpush.msra.mxu1 %v186_v31  ;;  %v224_v45 = vld [vmem:[%s4207_s1 + $0x460] sm:$0xff]  ;;  %v158_v49 = vld [vmem:[%s4207_s1 + $0x250] sm:$0xff]  ;;  %v97_v51 = vld [vmem:[%s4207_s1 + $0x68] sm:$0xff] }
  0x1e   :  { %2223 = vmatmul.msk.f32.vlgmr.msra.gmra.mxu3 %vm242_vm0, %v2538_v32  ;;  %269 = vmatpush.msra.mxu0 %v126_v33  ;;  %v96_v50 = vld [vmem:[%s4207_s1 + $0x60] sm:$0xff]  ;;  %v90_v53 = vld [vmem:[%s4207_s1 + $0x30] sm:$0xff]  ;;  %v91_v55 = vld [vmem:[%s4207_s1 + $0x38] sm:$0xff] }
  0x1f   :  { %339 = vmatpush.msra.mxu2 %v127_v34  ;;  %311 = vmatpush.msra.mxu1 %v180_v35  ;;  %v152_v52 = vld [vmem:[%s4207_s1 + $0x220] sm:$0xff]  ;;  %v218_v54 = vld [vmem:[%s4207_s1 + $0x430] sm:$0xff]  ;;  %v85_v59 = vld [vmem:[%s4207_s1 + $0x8] sm:$0xff] }
  0x20   :  { %270 = vmatpush.msra.mxu0 %v120_v36  ;;  %2217 = vmatmul.msk.f32.vlgmr.msra.gmra.mxu1 %vm242_vm0, %v2538_v32  ;;  %v146_v56 = vld [vmem:[%s4207_s1 + $0x1f0] sm:$0xff]  ;;  %v84_v57 = vld [vmem:[%s4207_s1] sm:$0xff]  ;;  %v2639_v61 = vld [vmem:[%s4206_s0 + $0x28] sm:$0xff] }
  0x21   :  { %340 = vmatpush.msra.mxu2 %v121_v37  ;;  %401 = vmatpush.msrb.mxu1 %v176_v38  ;;  %v212_v58 = vld [vmem:[%s4207_s1 + $0x400] sm:$0xff]  ;;  %v177_v63 = vld [vmem:[%s4207_s1 + $0x2e8] sm:$0xff]  ;;  %v206_v0 = vld [vmem:[%s4207_s1 + $0x3d0] sm:$0xff] }
  0x22   :  { %271 = vmatpush.msra.mxu0 %v114_v39  ;;  %444 = vmatpush.msrb.mxu3 %v224_v45  ;;  %v2634_v60 = vld [vmem:[%s4206_s0] sm:$0xff]  ;;  %v134_v1 = vld [vmem:[%s4207_s1 + $0x190] sm:$0xff]  ;;  %v171_v2 = vld [vmem:[%s4207_s1 + $0x2b8] sm:$0xff] }
  0x23   :  { %341 = vmatpush.msra.mxu2 %v115_v40  ;;  %402 = vmatpush.msrb.mxu1 %v170_v41  ;;  %v140_v62 = vld [vmem:[%s4207_s1 + $0x1c0] sm:$0xff]  ;;  %v225_v4 = vld [vmem:[%s4207_s1 + $0x468] sm:$0xff]  ;;  %v194_v7 = vld [vmem:[%s4207_s1 + $0x370] sm:$0xff] }
  0x24   :  { %272 = vmatpush.msra.mxu0 %v108_v42  ;;  %445 = vmatpush.msrb.mxu3 %v218_v54  ;;  %v200_v3 = vld [vmem:[%s4207_s1 + $0x3a0] sm:$0xff]  ;;  %v165_v6 = vld [vmem:[%s4207_s1 + $0x288] sm:$0xff]  ;;  %v219_v8 = vld [vmem:[%s4207_s1 + $0x438] sm:$0xff] }
  0x25   :  { %342 = vmatpush.msra.mxu2 %v109_v43  ;;  %403 = vmatpush.msrb.mxu1 %v164_v44  ;;  %v128_v5 = vld [vmem:[%s4207_s1 + $0x160] sm:$0xff]  ;;  %v2683_v9 = vld [vmem:[%s4206_s0 + $0x10] sm:$0xff]  ;;  %v2691_v11 = vld [vmem:[%s4206_s0 + $0x38] sm:$0xff] }
  0x26   :  { %2224 = vmatmul.msk.f32.gmra.mxu3 %vm242_vm0, %v2586_v46  ;;  %273 = vmatpush.msra.mxu0 %v102_v47  ;;  %v122_v10 = vld [vmem:[%s4207_s1 + $0x130] sm:$0xff]  ;;  %v116_v12 = vld [vmem:[%s4207_s1 + $0x100] sm:$0xff]  ;;  %v159_v13 = vld [vmem:[%s4207_s1 + $0x258] sm:$0xff] }
  0x27   :  { %343 = vmatpush.msra.mxu2 %v103_v48  ;;  %404 = vmatpush.msrb.mxu1 %v158_v49  ;;  %v188_v14 = vld [vmem:[%s4207_s1 + $0x340] sm:$0xff]  ;;  %v110_v15 = vld [vmem:[%s4207_s1 + $0xd0] sm:$0xff]  ;;  %v153_v16 = vld [vmem:[%s4207_s1 + $0x228] sm:$0xff] }
  0x28   :  { %274 = vmatpush.msra.mxu0 %v96_v50  ;;  %2218 = vmatmul.msk.f32.gmra.mxu1 %vm242_vm0, %v2586_v46  ;;  %v182_v17 = vld [vmem:[%s4207_s1 + $0x310] sm:$0xff]  ;;  %v213_v18 = vld [vmem:[%s4207_s1 + $0x408] sm:$0xff]  ;;  %v104_v19 = vld [vmem:[%s4207_s1 + $0xa0] sm:$0xff] }
  0x29   :  { %344 = vmatpush.msra.mxu2 %v97_v51  ;;  %405 = vmatpush.msrb.mxu1 %v152_v52  ;;  %v147_v20 = vld [vmem:[%s4207_s1 + $0x1f8] sm:$0xff]  ;;  %v2732_v22 = vld [vmem:[%s4206_s0 + $0x20] sm:$0xff]  ;;  %v98_v23 = vld [vmem:[%s4207_s1 + $0x70] sm:$0xff] }
  0x2a   :  { %275 = vmatpush.msra.mxu0 %v90_v53  ;;  %446 = vmatpush.msrb.mxu3 %v212_v58  ;;  %v207_v21 = vld [vmem:[%s4207_s1 + $0x3d8] sm:$0xff]  ;;  %v2740_v24 = vld [vmem:[%s4206_s0 + $0x48] sm:$0xff]  ;;  %v92_v25 = vld [vmem:[%s4207_s1 + $0x40] sm:$0xff] }
  0x2b   :  { %345 = vmatpush.msra.mxu2 %v91_v55  ;;  %406 = vmatpush.msrb.mxu1 %v146_v56  ;;  %v141_v26 = vld [vmem:[%s4207_s1 + $0x1c8] sm:$0xff]  ;;  %v86_v28 = vld [vmem:[%s4207_s1 + $0x10] sm:$0xff]  ;;  %v135_v29 = vld [vmem:[%s4207_s1 + $0x198] sm:$0xff] }
  0x2c   :  { %276 = vmatpush.msra.mxu0 %v84_v57  ;;  %447 = vmatpush.msrb.mxu3 %v206_v0  ;;  %v201_v27 = vld [vmem:[%s4207_s1 + $0x3a8] sm:$0xff]  ;;  %v195_v30 = vld [vmem:[%s4207_s1 + $0x378] sm:$0xff]  ;;  %v178_v33 = vld [vmem:[%s4207_s1 + $0x2f0] sm:$0xff] }
  0x2d   :  { %346 = vmatpush.msra.mxu2 %v85_v59  ;;  %277 = vmatmul.f32.vlgmr.msra.gmra.mxu0 %v2634_v60  ;;  %v129_v31 = vld [vmem:[%s4207_s1 + $0x168] sm:$0xff]  ;;  %v172_v35 = vld [vmem:[%s4207_s1 + $0x2c0] sm:$0xff]  ;;  %v2781_v36 = vld [vmem:[%s4206_s0 + $0x30] sm:$0xff] }
  0x2e   :  { %347 = vmatmul.f32.vlgmr.msra.gmra.mxu2 %v2634_v60  ;;  %2225 = vmatmul.msk.f32.gmra.mxu3 %vm242_vm0, %v2639_v61  ;;  %v189_v34 = vld [vmem:[%s4207_s1 + $0x348] sm:$0xff]  ;;  %v2786_v37 = vld [vmem:[%s4206_s0 + $0x58] sm:$0xff]  ;;  %v166_v41 = vld [vmem:[%s4207_s1 + $0x290] sm:$0xff] }
  0x2f   :  { %407 = vmatpush.msrb.mxu1 %v140_v62  ;;  %471 = vmatpush.msrb.mxu0 %v177_v63  ;;  %v123_v38 = vld [vmem:[%s4207_s1 + $0x138] sm:$0xff]  ;;  %v117_v40 = vld [vmem:[%s4207_s1 + $0x108] sm:$0xff]  ;;  %v160_v43 = vld [vmem:[%s4207_s1 + $0x260] sm:$0xff] }
  0x30   :  { %2219 = vmatmul.msk.f32.gmra.mxu1 %vm242_vm0, %v2639_v61  ;;  %448 = vmatpush.msrb.mxu3 %v200_v3  ;;  %v183_v39 = vld [vmem:[%s4207_s1 + $0x318] sm:$0xff]  ;;  %v2815_v44 = vld [vmem:[%s4206_s0 + $0x40] sm:$0xff]  ;;  %v154_v45 = vld [vmem:[%s4207_s1 + $0x230] sm:$0xff] }
  0x31   :  { %408 = vmatpush.msrb.mxu1 %v134_v1  ;;  %472 = vmatpush.msrb.mxu0 %v171_v2  ;;  %v111_v42 = vld [vmem:[%s4207_s1 + $0xd8] sm:$0xff]  ;;  %v105_v47 = vld [vmem:[%s4207_s1 + $0xa8] sm:$0xff]  ;;  %v148_v48 = vld [vmem:[%s4207_s1 + $0x200] sm:$0xff] }
  0x32   :  { %514 = vmatpush.msrb.mxu2 %v225_v4  ;;  %449 = vmatpush.msrb.mxu3 %v194_v7  ;;  %v99_v49 = vld [vmem:[%s4207_s1 + $0x78] sm:$0xff]  ;;  %v142_v50 = vld [vmem:[%s4207_s1 + $0x1d0] sm:$0xff]  ;;  %v220_v52 = vld [vmem:[%s4207_s1 + $0x440] sm:$0xff] }
  0x33   :  { %409 = vmatpush.msrb.mxu1 %v128_v5  ;;  %473 = vmatpush.msrb.mxu0 %v165_v6  ;;  %v226_v51 = vld [vmem:[%s4207_s1 + $0x470] sm:$0xff]  ;;  %v93_v53 = vld [vmem:[%s4207_s1 + $0x48] sm:$0xff]  ;;  %v136_v54 = vld [vmem:[%s4207_s1 + $0x1a0] sm:$0xff] }
  0x34   :  { %515 = vmatpush.msrb.mxu2 %v219_v8  ;;  %450 = vmatpush.msrb.mxu3 %v188_v14  ;;  %v214_v55 = vld [vmem:[%s4207_s1 + $0x410] sm:$0xff]  ;;  %v87_v58 = vld [vmem:[%s4207_s1 + $0x18] sm:$0xff]  ;;  %v124_v59 = vld [vmem:[%s4207_s1 + $0x140] sm:$0xff] }
  0x35   :  { %280 = vmatmul.f32.gmra.mxu0 %v2683_v9  ;;  %410 = vmatpush.msrb.mxu1 %v122_v10  ;;  %v2855_v56 = vld [vmem:[%s4206_s0 + $0x50] sm:$0xff]  ;;  %v179_v62 = vld [vmem:[%s4207_s1 + $0x2f8] sm:$0xff]  ;;  %v208_v63 = vld [vmem:[%s4207_s1 + $0x3e0] sm:$0xff] }
  0x36   :  { %350 = vmatmul.f32.gmra.mxu2 %v2683_v9  ;;  %2226 = vmatmul.msk.f32.gmra.mxu3 %vm242_vm0, %v2691_v11  ;;  %v130_v57 = vld [vmem:[%s4207_s1 + $0x170] sm:$0xff]  ;;  %v173_v1 = vld [vmem:[%s4207_s1 + $0x2c8] sm:$0xff]  ;;  %v227_v2 = vld [vmem:[%s4207_s1 + $0x478] sm:$0xff] }
  0x37   :  { %411 = vmatpush.msrb.mxu1 %v116_v12  ;;  %474 = vmatpush.msrb.mxu0 %v159_v13  ;;  %v118_v0 = vld [vmem:[%s4207_s1 + $0x110] sm:$0xff]  ;;  %v112_v4 = vld [vmem:[%s4207_s1 + $0xe0] sm:$0xff]  ;;  %v167_v5 = vld [vmem:[%s4207_s1 + $0x298] sm:$0xff] }
  0x38   :  { %2220 = vmatmul.msk.f32.gmra.mxu1 %vm242_vm0, %v2691_v11  ;;  %451 = vmatpush.msrb.mxu3 %v182_v17  ;;  %v202_v3 = vld [vmem:[%s4207_s1 + $0x3b0] sm:$0xff]  ;;  %v196_v6 = vld [vmem:[%s4207_s1 + $0x380] sm:$0xff]  ;;  %v221_v7 = vld [vmem:[%s4207_s1 + $0x448] sm:$0xff] }
  0x39   :  { %412 = vmatpush.msrb.mxu1 %v110_v15  ;;  %475 = vmatpush.msrb.mxu0 %v153_v16  ;;  %v161_v8 = vld [vmem:[%s4207_s1 + $0x268] sm:$0xff]  ;;  %v106_v10 = vld [vmem:[%s4207_s1 + $0xb0] sm:$0xff]  ;;  %v155_v13 = vld [vmem:[%s4207_s1 + $0x238] sm:$0xff] }
  0x3a   :  { %516 = vmatpush.msrb.mxu2 %v213_v18  ;;  %584 = vmatpush.msra.mxu3 %v226_v51  ;;  %v190_v12 = vld [vmem:[%s4207_s1 + $0x350] sm:$0xff]  ;;  %v100_v14 = vld [vmem:[%s4207_s1 + $0x80] sm:$0xff]  ;;  %v149_v16 = vld [vmem:[%s4207_s1 + $0x208] sm:$0xff] }
  0x3b   :  { %413 = vmatpush.msrb.mxu1 %v104_v19  ;;  %476 = vmatpush.msrb.mxu0 %v147_v20  ;;  %v184_v15 = vld [vmem:[%s4207_s1 + $0x320] sm:$0xff]  ;;  %v94_v17 = vld [vmem:[%s4207_s1 + $0x50] sm:$0xff]  ;;  %v215_v18 = vld [vmem:[%s4207_s1 + $0x418] sm:$0xff] }
  0x3c   :  { %517 = vmatpush.msrb.mxu2 %v207_v21  ;;  %585 = vmatpush.msra.mxu3 %v220_v52  ;;  %v209_v19 = vld [vmem:[%s4207_s1 + $0x3e8] sm:$0xff]  ;;  %v88_v20 = vld [vmem:[%s4207_s1 + $0x20] sm:$0xff]  ;;  %v143_v21 = vld [vmem:[%s4207_s1 + $0x1d8] sm:$0xff] }
  0x3d   :  { %283 = vmatmul.f32.gmra.mxu0 %v2732_v22  ;;  %414 = vmatpush.msrb.mxu1 %v98_v23  ;;  %v137_v23 = vld [vmem:[%s4207_s1 + $0x1a8] sm:$0xff] }
  0x3e   :  { %353 = vmatmul.f32.gmra.mxu2 %v2732_v22  ;;  %2227 = vmatmul.msk.f32.gmra.mxu3 %vm242_vm0, %v2740_v24 }
  0x3f   :  { %415 = vmatpush.msrb.mxu1 %v92_v25  ;;  %477 = vmatpush.msrb.mxu0 %v141_v26  ;;  %v203_v25 = vld [vmem:[%s4207_s1 + $0x3b8] sm:$0xff]  ;;  %v197_v26 = vld [vmem:[%s4207_s1 + $0x388] sm:$0xff] }
  0x40   :  { %2221 = vmatmul.msk.f32.gmra.mxu1 %vm242_vm0, %v2740_v24  ;;  %518 = vmatpush.msrb.mxu2 %v201_v27  ;;  %v131_v27 = vld [vmem:[%s4207_s1 + $0x178] sm:$0xff] }
  0x41   :  { %416 = vmatpush.msrb.mxu1 %v86_v28  ;;  %478 = vmatpush.msrb.mxu0 %v135_v29  ;;  %v191_v28 = vld [vmem:[%s4207_s1 + $0x358] sm:$0xff]  ;;  %v185_v29 = vld [vmem:[%s4207_s1 + $0x328] sm:$0xff] }
  0x42   :  { %519 = vmatpush.msrb.mxu2 %v195_v30  ;;  %586 = vmatpush.msra.mxu3 %v214_v55  ;;  %v125_v30 = vld [vmem:[%s4207_s1 + $0x148] sm:$0xff] }
  0x43   :  { %541 = vmatpush.msra.mxu1 %v178_v33  ;;  %479 = vmatpush.msrb.mxu0 %v129_v31  ;;  %v119_v31 = vld [vmem:[%s4207_s1 + $0x118] sm:$0xff]  ;;  %v113_v33 = vld [vmem:[%s4207_s1 + $0xe8] sm:$0xff] }
  0x44   :  { %520 = vmatpush.msrb.mxu2 %v189_v34  ;;  %587 = vmatpush.msra.mxu3 %v208_v63  ;;  %v107_v34 = vld [vmem:[%s4207_s1 + $0xb8] sm:$0xff] }
  0x45   :  { %542 = vmatpush.msra.mxu1 %v172_v35  ;;  %286 = vmatmul.f32.gmra.mxu0 %v2781_v36  ;;  %v101_v35 = vld [vmem:[%s4207_s1 + $0x88] sm:$0xff] }
  0x46   :  { %356 = vmatmul.f32.gmra.mxu2 %v2781_v36  ;;  %2228 = vmatmul.msk.f32.gmra.mxu3 %vm242_vm0, %v2786_v37 }
  0x47   :  { %480 = vmatpush.msrb.mxu0 %v123_v38  ;;  %521 = vmatpush.msrb.mxu2 %v183_v39  ;;  %v95_v38 = vld [vmem:[%s4207_s1 + $0x58] sm:$0xff]  ;;  %v89_v39 = vld [vmem:[%s4207_s1 + $0x28] sm:$0xff] }
  0x48   :  { %2222 = vmatmul.msk.f32.gmra.mxu1 %vm242_vm0, %v2786_v37  ;;  %588 = vmatpush.msra.mxu3 %v202_v3 }
  0x49   :  { %481 = vmatpush.msrb.mxu0 %v117_v40  ;;  %543 = vmatpush.msra.mxu1 %v166_v41 }
  0x4a   :  { %654 = vmatpush.msra.mxu2 %v227_v2  ;;  %589 = vmatpush.msra.mxu3 %v196_v6 }
  0x4b   :  { %482 = vmatpush.msrb.mxu0 %v111_v42  ;;  %544 = vmatpush.msra.mxu1 %v160_v43 }
  0x4c   :  { %655 = vmatpush.msra.mxu2 %v221_v7  ;;  %590 = vmatpush.msra.mxu3 %v190_v12 }
  0x4d   :  { %289 = vmatmul.f32.gmra.mxu0 %v2815_v44  ;;  %545 = vmatpush.msra.mxu1 %v154_v45 }
  0x4e   :  { %359 = vmatmul.f32.gmra.mxu2 %v2815_v44  ;;  %2229 = vmatmul.msk.f32.vlgmr.msrb.gmra.mxu3 %vm242_vm0, %v2538_v32 }
  0x4f   :  { %483 = vmatpush.msrb.mxu0 %v105_v47  ;;  %546 = vmatpush.msra.mxu1 %v148_v48 }
  0x50   :  { %417 = vmatmul.f32.vlgmr.msrb.gmra.mxu1 %v2634_v60  ;;  %591 = vmatpush.msra.mxu3 %v184_v15 }
  0x51   :  { %484 = vmatpush.msrb.mxu0 %v99_v49  ;;  %547 = vmatpush.msra.mxu1 %v142_v50 }
  0x52   :  { %656 = vmatpush.msra.mxu2 %v215_v18 }
  0x53   :  { %485 = vmatpush.msrb.mxu0 %v93_v53  ;;  %548 = vmatpush.msra.mxu1 %v136_v54 }
  0x54   :  { %657 = vmatpush.msra.mxu2 %v209_v19 }
  0x55   :  { %292 = vmatmul.f32.gmra.mxu0 %v2855_v56  ;;  %549 = vmatpush.msra.mxu1 %v130_v57  ;;  %v3079_v57 = vld [vmem:[%s4208_s2] sm:$0x3f]  ;;  %s2369_s2 = smov 96  }
  0x56   :  { %362 = vmatmul.f32.gmra.mxu2 %v2855_v56  ;;  %2230 = vmatmul.msk.f32.gmra.mxu3 %vm242_vm0, %v2586_v46  ;;  %v3087_v63 = vperm.slane %v3079_v57, 3 }
  0x57   :  { %486 = vmatpush.msrb.mxu0 %v87_v58  ;;  %550 = vmatpush.msra.mxu1 %v124_v59 }
  0x58   :  { %420 = vmatmul.f32.gmra.mxu1 %v2683_v9  ;;  %658 = vmatpush.msra.mxu2 %v203_v25 }
  0x59   :  { %611 = vmatpush.msra.mxu0 %v179_v62  ;;  %551 = vmatpush.msra.mxu1 %v118_v0  ;;  %v230_v62 = vperm.slane %v3079_v57, 0 }
  0x5a   :  { %659 = vmatpush.msra.mxu2 %v197_v26 }
  0x5b   :  { %612 = vmatpush.msra.mxu0 %v173_v1  ;;  %552 = vmatpush.msra.mxu1 %v112_v4 }
  0x5c   :  { %660 = vmatpush.msra.mxu2 %v191_v28 }
  0x5d   :  { %613 = vmatpush.msra.mxu0 %v167_v5  ;;  %553 = vmatpush.msra.mxu1 %v106_v10 }
  0x5e   :  { %487 = vmatmul.f32.vlgmr.msrb.gmra.mxu0 %v2634_v60  ;;  %2231 = vmatmul.msk.f32.gmra.mxu3 %vm242_vm0, %v2639_v61 }
  0x5f   :  { %2235 = vmatmul.msk.f32.vlgmr.msrb.gmra.mxu2 %vm242_vm0, %v2538_v32  ;;  %614 = vmatpush.msra.mxu0 %v161_v8 }
  0x60   :  { %423 = vmatmul.f32.gmra.mxu1 %v2732_v22  ;;  %661 = vmatpush.msra.mxu2 %v185_v29 }
  0x61   :  { %615 = vmatpush.msra.mxu0 %v155_v13  ;;  %554 = vmatpush.msra.mxu1 %v100_v14 }
  0x63   :  { %616 = vmatpush.msra.mxu0 %v149_v16  ;;  %555 = vmatpush.msra.mxu1 %v94_v17 }
  0x65   :  { %556 = vmatpush.msra.mxu1 %v88_v20  ;;  %617 = vmatpush.msra.mxu0 %v143_v21 }
  0x66   :  { %490 = vmatmul.f32.gmra.mxu0 %v2683_v9  ;;  %2232 = vmatmul.msk.f32.gmra.mxu3 %vm242_vm0, %v2691_v11 }
  0x67   :  { %2236 = vmatmul.msk.f32.gmra.mxu2 %vm242_vm0, %v2586_v46  ;;  %618 = vmatpush.msra.mxu0 %v137_v23 }
  0x68   :  { %426 = vmatmul.f32.gmra.mxu1 %v2781_v36 }
  0x69   :  { %619 = vmatpush.msra.mxu0 %v131_v27 }
  0x6b   :  { %620 = vmatpush.msra.mxu0 %v125_v30 }
  0x6d   :  { %621 = vmatpush.msra.mxu0 %v119_v31 }
  0x6e   :  { %493 = vmatmul.f32.gmra.mxu0 %v2732_v22  ;;  %2233 = vmatmul.msk.f32.gmra.mxu3 %vm242_vm0, %v2740_v24 }
  0x6f   :  { %2237 = vmatmul.msk.f32.gmra.mxu2 %vm242_vm0, %v2639_v61  ;;  %622 = vmatpush.msra.mxu0 %v113_v33 }
  0x70   :  { %429 = vmatmul.f32.gmra.mxu1 %v2815_v44 }
  0x71   :  { %623 = vmatpush.msra.mxu0 %v107_v34 }
  0x73   :  { %624 = vmatpush.msra.mxu0 %v101_v35 }
  0x75   :  { %625 = vmatpush.msra.mxu0 %v95_v38 }
  0x76   :  { %496 = vmatmul.f32.gmra.mxu0 %v2781_v36  ;;  %2234 = vmatmul.msk.f32.gmra.mxu3 %vm242_vm0, %v2786_v37 }
  0x77   :  { %2238 = vmatmul.msk.f32.gmra.mxu2 %vm242_vm0, %v2691_v11  ;;  %626 = vmatpush.msra.mxu0 %v89_v39 }
  0x78   :  { %432 = vmatmul.f32.gmra.mxu1 %v2855_v56 }
  0x7e   :  { %499 = vmatmul.f32.gmra.mxu0 %v2815_v44  ;;  %2241 = vmatmul.msk.f32.vlgmr.msra.gmra.mxu3 %vm242_vm0, %v2538_v32 }
  0x7f   :  { %2239 = vmatmul.msk.f32.gmra.mxu2 %vm242_vm0, %v2740_v24 }
  0x80   :  { %557 = vmatmul.f32.vlgmr.msra.gmra.mxu1 %v2634_v60 }
  0x86   :  { %502 = vmatmul.f32.gmra.mxu0 %v2855_v56  ;;  %2242 = vmatmul.msk.f32.gmra.mxu3 %vm242_vm0, %v2586_v46 }
  0x87   :  { %2240 = vmatmul.msk.f32.gmra.mxu2 %vm242_vm0, %v2786_v37 }
  0x88   :  { %560 = vmatmul.f32.gmra.mxu1 %v2683_v9 }
  0x8e   :  { %627 = vmatmul.f32.vlgmr.msra.gmra.mxu0 %v2634_v60  ;;  %2243 = vmatmul.msk.f32.gmra.mxu3 %vm242_vm0, %v2639_v61 }
  0x8f   :  { %2247 = vmatmul.msk.f32.vlgmr.msra.gmra.mxu2 %vm242_vm0, %v2538_v32 }
  0x90   :  { %563 = vmatmul.f32.gmra.mxu1 %v2732_v22 }
  0x96   :  { %630 = vmatmul.f32.gmra.mxu0 %v2683_v9  ;;  %2244 = vmatmul.msk.f32.gmra.mxu3 %vm242_vm0, %v2691_v11 }
  0x97   :  { %2248 = vmatmul.msk.f32.gmra.mxu2 %vm242_vm0, %v2586_v46 }
  0x98   :  { %566 = vmatmul.f32.gmra.mxu1 %v2781_v36 }
  0x9d   :  { %v313_v40 = vpop.f32.mrf.mxu1 }
  0x9e   :  { %633 = vmatmul.f32.gmra.mxu0 %v2732_v22  ;;  %2245 = vmatmul.msk.f32.gmra.mxu3 %vm242_vm0, %v2740_v24 }
  0x9f   :  { %2249 = vmatmul.msk.f32.gmra.mxu2 %vm242_vm0, %v2639_v61 }
  0xa0   :  { %569 = vmatmul.f32.gmra.mxu1 %v2815_v44 }
  0xa1   :  { %v3030_v32 = vpop.f32.mrf.mxu3 }
  0xa5   :  { %v316_v60 = vpop.f32.mrf.mxu1 }
  0xa6   :  { %636 = vmatmul.f32.gmra.mxu0 %v2781_v36  ;;  %2246 = vmatmul.msk.f32.gmra.mxu3 %vm242_vm0, %v2786_v37 }
  0xa7   :  { %2250 = vmatmul.msk.f32.gmra.mxu2 %vm242_vm0, %v2691_v11 }
  0xa8   :  { %572 = vmatmul.f32.gmra.mxu1 %v2855_v56 }
  0xa9   :  { %v3038_v46 = vpop.f32.mrf.mxu3 }
  0xaa   :  { %v278_v9 = vpop.f32.mrf.mxu0 }
  0xab   :  { %v279_v2 = vadd.f32 %v278_v9, %v230_v62 }
  0xad   :  { %v319_v22 = vpop.f32.mrf.mxu1  ;;  %v314_v7 = vadd.f32 %v313_v40, %v279_v2  ;;  %v3122_v40 = vperm.slane %v3079_v57, 1 }
  0xae   :  { %639 = vmatmul.f32.gmra.mxu0 %v2815_v44 }
  0xaf   :  { %2251 = vmatmul.msk.f32.gmra.mxu2 %vm242_vm0, %v2740_v24 }
  0xb1   :  { %v3043_v61 = vpop.f32.mrf.mxu2  ;;  %v3045_v36 = vpop.f32.mrf.mxu3 }
  0xb2   :  { %v281_v41 = vpop.f32.mrf.mxu0 }
  0xb3   :  { %v282_v13 = vadd.f32 %v281_v41, %v230_v62  ;;  %v3125_v41 = vperm.slane %v3079_v57, 4 }
  0xb5   :  { %v322_v42 = vpop.f32.mrf.mxu1  ;;  %v317_v17 = vadd.f32 %v316_v60, %v282_v13 }
  0xb6   :  { %642 = vmatmul.f32.gmra.mxu0 %v2855_v56 }
  0xb7   :  { %2252 = vmatmul.msk.f32.gmra.mxu2 %vm242_vm0, %v2786_v37 }
  0xb9   :  { %v3050_v11 = vpop.f32.mrf.mxu2  ;;  %v3052_v43 = vpop.f32.mrf.mxu3 }
  0xba   :  { %v284_v45 = vpop.f32.mrf.mxu0 }
  0xbb   :  { %v285_v23 = vadd.f32 %v284_v45, %v230_v62 }
  0xbd   :  { %v3054_v44 = vpop.f32.mrf.mxu1  ;;  %v320_v28 = vadd.f32 %v319_v22, %v285_v23  ;;  %v3151_v23 = vperm.slane %v3079_v57, 2 }
  0xc1   :  { %v3056_v47 = vpop.f32.mrf.mxu2  ;;  %v3058_v24 = vpop.f32.mrf.mxu3 }
  0xc2   :  { %v287_v48 = vpop.f32.mrf.mxu0 }
  0xc3   :  { %v288_v34 = vadd.f32 %v287_v48, %v230_v62 }
  0xc5   :  { %v3060_v49 = vpop.f32.mrf.mxu1  ;;  %v323_v60 = vadd.f32 %v322_v42, %v288_v34 }
  0xc9   :  { %v3062_v50 = vpop.f32.mrf.mxu2  ;;  %v3064_v51 = vpop.f32.mrf.mxu3 }
  0xca   :  { %v290_v52 = vpop.f32.mrf.mxu0 }
  0xcb   :  { %v291_v2 = vadd.f32 %v290_v52, %v230_v62  ;;  %v352_v52 = vadd.f32 %v3050_v11, %v3122_v40 }
  0xcd   :  { %v3066_v37 = vpop.f32.mrf.mxu1  ;;  %v387_v11 = vadd.f32 %v3038_v46, %v352_v52 }
  0xd1   :  { %v3068_v53 = vpop.f32.mrf.mxu2  ;;  %v3070_v54 = vpop.f32.mrf.mxu3 }
  0xd2   :  { %v3072_v55 = vpop.f32.mrf.mxu0 }
  0xd5   :  { %v3074_v56 = vpop.f32.mrf.mxu1 }
  0xd9   :  { %v3081_v58 = vpop.f32.mrf.mxu2  ;;  %v3083_v59 = vpop.f32.mrf.mxu3 }
  0xdb   :  { %v488_v0 = vpop.f32.mrf.mxu0 }
  0xdc   :  { %v489_v3 = vadd.f32 %v488_v0, %v3087_v63  ;;  %v349_v0 = vadd.f32 %v3043_v61, %v3122_v40 }
  0xdd   :  { %v3089_v1 = vpop.f32.mrf.mxu1 }
  0xe1   :  { %v3092_v4 = vpop.f32.mrf.mxu3 }
  0xe2   :  { %v523_v5 = vpop.f32.mrf.mxu2 }
  0xe3   :  { %v524_v6 = vadd.f32 %v523_v5, %v489_v3  ;;  %v491_v8 = vpop.f32.mrf.mxu0 }
  0xe4   :  { %v492_v14 = vadd.f32 %v491_v8, %v3087_v63 }
  0xe5   :  { %v3094_v10 = vmax.f32 %v314_v7, %v524_v6  ;;  %v3096_v12 = vpop.f32.mrf.mxu1  ;;  %v326_v7 = vadd.f32 %v3054_v44, %v291_v2 }
  0xe7   :  { %789 = vrot.lane.b32.xlu2 %v3094_v10, %s2369_s2 }
  0xe9   :  { %v3101_v15 = vpop.f32.mrf.mxu3 }
  0xea   :  { %v526_v16 = vpop.f32.mrf.mxu2 }
  0xeb   :  { %v527_v18 = vadd.f32 %v526_v16, %v492_v14  ;;  %v494_v19 = vpop.f32.mrf.mxu0  ;;  %v384_v14 = vadd.f32 %v3030_v32, %v349_v0 }
  0xec   :  { %v495_v25 = vadd.f32 %v494_v19, %v3087_v63  ;;  %v294_v19 = vadd.f32 %v3072_v55, %v230_v62 }
  0xed   :  { %v3103_v20 = vmax.f32 %v317_v17, %v527_v18  ;;  %v3105_v21 = vpop.f32.mrf.mxu1 }
  0xef   :  { %795 = vrot.lane.b32.xlu2 %v3103_v20, %s2369_s2 }
  0xf1   :  { %v3110_v26 = vpop.f32.mrf.mxu3 }
  0xf2   :  { %v529_v27 = vpop.f32.mrf.mxu2 }
  0xf3   :  { %v530_v29 = vadd.f32 %v529_v27, %v495_v25  ;;  %v497_v30 = vpop.f32.mrf.mxu0 }
  0xf4   :  { %v498_v35 = vadd.f32 %v497_v30, %v3087_v63 }
  0xf5   :  { %v3112_v31 = vmax.f32 %v320_v28, %v530_v29  ;;  %v3114_v33 = vpop.f32.mrf.mxu1  ;;  %v329_v28 = vadd.f32 %v3060_v49, %v294_v19  ;;  %v3156_v29 = vperm.slane %v3079_v57, 5 }
  0xf7   :  { %801 = vrot.lane.b32.xlu2 %v3112_v31, %s2369_s2 }
  0xf9   :  { %v3119_v38 = vpop.f32.mrf.mxu3 }
  0xfa   :  { %v532_v39 = vpop.f32.mrf.mxu2 }
  0xfb   :  { %v533_v9 = vadd.f32 %v532_v39, %v498_v35  ;;  %v500_v22 = vpop.f32.mrf.mxu0  ;;  %v419_v39 = vadd.f32 %v3066_v37, %v3151_v23  ;;  %v355_v37 = vadd.f32 %v3056_v47, %v3122_v40 }
  0xfc   :  { %v501_v3 = vadd.f32 %v500_v22, %v3087_v63 }
  0xfd   :  { %v3127_v45 = vmax.f32 %v323_v60, %v533_v9  ;;  %v558_v48 = vpop.f32.mrf.mxu1  ;;  %v454_v60 = vadd.f32 %v3070_v54, %v419_v39 }
  0xfe   :  { %v559_v5 = vadd.f32 %v558_v48, %v3125_v41 }
  0xff   :  { %807 = vrot.lane.b32.xlu2 %v3127_v45, %s2369_s2 }
 0x101   :  { %v593_v6 = vpop.f32.mrf.mxu3 }
 0x102   :  { %v535_v42 = vpop.f32.mrf.mxu2  ;;  %v594_v13 = vadd.f32 %v593_v6, %v559_v5 }
 0x103   :  { %v536_v8 = vadd.f32 %v535_v42, %v501_v3  ;;  %v503_v16 = vpop.f32.mrf.mxu0  ;;  %v422_v3 = vadd.f32 %v3074_v56, %v3151_v23  ;;  %v358_v56 = vadd.f32 %v3062_v50, %v3122_v40 }
 0x104   :  { %v3139_v61 = vmax.f32 %v384_v14, %v594_v13  ;;  %v504_v44 = vadd.f32 %v503_v16, %v3087_v63 }
 0x105   :  { %v3137_v17 = vmax.f32 %v326_v7, %v536_v8  ;;  %v561_v18 = vpop.f32.mrf.mxu1  ;;  %v390_v7 = vadd.f32 %v3045_v36, %v355_v37  ;;  %v457_v8 = vadd.f32 %v3083_v59, %v422_v3 }
 0x106   :  { %791 = vrot.lane.b32.xlu0 %v3139_v61, %s2369_s2  ;;  %v562_v32 = vadd.f32 %v561_v18, %v3125_v41  ;;  %v425_v18 = vadd.f32 %v3089_v1, %v3151_v23 }
 0x107   :  { %813 = vrot.lane.b32.xlu2 %v3137_v17, %s2369_s2 }
 0x109   :  { %v596_v27 = vpop.f32.mrf.mxu3 }
 0x10a   :  { %v538_v25 = vpop.f32.mrf.mxu2  ;;  %v597_v62 = vadd.f32 %v596_v27, %v562_v32  ;;  %v393_v32 = vadd.f32 %v3052_v43, %v358_v56  ;;  %v1047_v56 = vld [vmem:[%s4210_s4 + $0xb0] sm:$0xff] }
 0x10b   :  { %v539_v55 = vadd.f32 %v538_v25, %v504_v44  ;;  %v628_v30 = vpop.f32.mrf.mxu0  ;;  %v460_v25 = vadd.f32 %v3092_v4, %v425_v18  ;;  %v1048_v18 = vld [vmem:[%s4210_s4 + $0xb8] sm:$0xff] }
 0x10c   :  { %v3160_v63 = vmax.f32 %v387_v11, %v597_v62  ;;  %v629_v46 = vadd.f32 %v628_v30, %v3156_v29  ;;  %v361_v62 = vadd.f32 %v3068_v53, %v3122_v40  ;;  %v428_v30 = vadd.f32 %v3096_v12, %v3151_v23 }
 0x10d   :  { %v3158_v34 = vmax.f32 %v329_v28, %v539_v55  ;;  %v564_v35 = vpop.f32.mrf.mxu1 }
 0x10e   :  { %797 = vrot.lane.b32.xlu1 %v3160_v63, %s2369_s2  ;;  %v565_v48 = vadd.f32 %v564_v35, %v3125_v41 }
 0x10f   :  { %819 = vrot.lane.b32.xlu2 %v3158_v34, %s2369_s2 }
 0x111   :  { %v599_v49 = vpop.f32.mrf.mxu3 }
 0x112   :  { %v663_v57 = vpop.f32.mrf.mxu2  ;;  %v600_v42 = vadd.f32 %v599_v49, %v565_v48  ;;  %v463_v49 = vadd.f32 %v3101_v15, %v428_v30  ;;  %v364_v48 = vadd.f32 %v3081_v58, %v3122_v40  ;;  %v1038_v30 = vld [vmem:[%s4210_s4 + $0x68] sm:$0xff] }
 0x113   :  { %v664_v9 = vadd.f32 %v663_v57, %v629_v46  ;;  %v631_v22 = vpop.f32.mrf.mxu0  ;;  %v396_v46 = vadd.f32 %v3058_v24, %v361_v62  ;;  %v1085_v62 = vld [vmem:[%s4210_s4 + $0x1e0] sm:$0xff] }
 0x114   :  { %v632_v5 = vadd.f32 %v631_v22, %v3156_v29  ;;  %v3182_v16 = vmax.f32 %v390_v7, %v600_v42 }
 0x115   :  { %v3171_v0 = vmax.f32 %v454_v60, %v664_v9  ;;  %v567_v2 = vpop.f32.mrf.mxu1 }
 0x116   :  { %v568_v47 = vadd.f32 %v567_v2, %v3125_v41  ;;  %v431_v2 = vadd.f32 %v3105_v21, %v3151_v23  ;;  %v434_v21 = vadd.f32 %v3114_v33, %v3151_v23  ;;  %v1055_v33 = vld [vmem:[%s4210_s4 + $0xf0] sm:$0xff]  ;;  %v1056_v23 = vld [vmem:[%s4210_s4 + $0xf8] sm:$0xff] }
 0x117   :  { %793 = vrot.lane.b32.xlu0 %v3171_v0, %s2369_s2  ;;  %1198 = vmatpush.msrb.mxu1 %v1055_v33  ;;  %v1067_v33 = vld [vmem:[%s4210_s4 + $0x150] sm:$0xff] }
 0x118   :  { %v466_v3 = vadd.f32 %v3110_v26, %v431_v2  ;;  %v469_v26 = vadd.f32 %v3119_v38, %v434_v21  ;;  %1303 = vmatpush.msrb.mxu2 %v1056_v23  ;;  %v1054_v38 = vld [vmem:[%s4210_s4 + $0xe8] sm:$0xff]  ;;  %v1109_v21 = vld [vmem:[%s4210_s4 + $0x2a0] sm:$0xff] }
 0x119   :  { %v602_v54 = vpop.f32.mrf.mxu3  ;;  %v1030_v2 = vld [vmem:[%s4210_s4 + $0x28] sm:$0xff]  ;;  %v1065_v23 = vld [vmem:[%s4210_s4 + $0x140] sm:$0xff] }
 0x11a   :  { %v666_v6 = vpop.f32.mrf.mxu2  ;;  %v603_v19 = vadd.f32 %v602_v54, %v568_v47  ;;  %1304 = vmatpush.msrb.mxu2 %v1054_v38  ;;  %v1050_v47 = vld [vmem:[%s4210_s4 + $0xc8] sm:$0xff]  ;;  %v1063_v38 = vld [vmem:[%s4210_s4 + $0x130] sm:$0xff] }
 0x11b   :  { %v667_v13 = vadd.f32 %v666_v6, %v632_v5  ;;  %v634_v14 = vpop.f32.mrf.mxu0 }
 0x11c   :  { %v635_v36 = vadd.f32 %v634_v14, %v3156_v29  ;;  %v3198_v28 = vmax.f32 %v393_v32, %v603_v19  ;;  %v1049_v14 = vld [vmem:[%s4210_s4 + $0xc0] sm:$0xff]  ;;  %v1043_v19 = vld [vmem:[%s4210_s4 + $0x90] sm:$0xff] }
 0x11d   :  { %v3185_v52 = vmax.f32 %v457_v8, %v667_v13  ;;  %v570_v59 = vpop.f32.mrf.mxu1  ;;  %v1051_v8 = vld [vmem:[%s4210_s4 + $0xd0] sm:$0xff]  ;;  %v1052_v13 = vld [vmem:[%s4210_s4 + $0xd8] sm:$0xff]  ;;  %v1041_v32 = vld [vmem:[%s4210_s4 + $0x80] sm:$0xff] }
 0x11e   :  { %v571_v1 = vadd.f32 %v570_v59, %v3125_v41  ;;  %1305 = vmatpush.msrb.mxu2 %v1052_v13  ;;  %v1046_v59 = vld [vmem:[%s4210_s4 + $0xa8] sm:$0xff]  ;;  %v1061_v13 = vld [vmem:[%s4210_s4 + $0x120] sm:$0xff] }
 0x11f   :  { %799 = vrot.lane.b32.xlu1 %v3185_v52, %s2369_s2  ;;  %803 = vrot.lane.b32.xlu0 %v3182_v16, %s2369_s2 }
 0x120   :  { %1306 = vmatpush.msrb.mxu2 %v1050_v47  ;;  %v1099_v47 = vld [vmem:[%s4210_s4 + $0x250] sm:$0xff] }
 0x121   :  { %v605_v11 = vpop.f32.mrf.mxu3 }
 0x122   :  { %v669_v44 = vpop.f32.mrf.mxu2  ;;  %v606_v4 = vadd.f32 %v605_v11, %v571_v1  ;;  %1307 = vmatpush.msrb.mxu2 %v1048_v18  ;;  %v1040_v11 = vld [vmem:[%s4210_s4 + $0x78] sm:$0xff]  ;;  %v1037_v1 = vld [vmem:[%s4210_s4 + $0x60] sm:$0xff] }
 0x123   :  { %v670_v27 = vadd.f32 %v669_v44, %v635_v36  ;;  %v637_v50 = vpop.f32.mrf.mxu0  ;;  %v1045_v36 = vld [vmem:[%s4210_s4 + $0xa0] sm:$0xff]  ;;  %v1044_v44 = vld [vmem:[%s4210_s4 + $0x98] sm:$0xff] }
 0x124   :  { %v638_v43 = vadd.f32 %v637_v50, %v3156_v29  ;;  %v3214_v60 = vmax.f32 %v396_v46, %v606_v4  ;;  %1308 = vmatpush.msrb.mxu2 %v1046_v59  ;;  %v1087_v50 = vld [vmem:[%s4210_s4 + $0x1f0] sm:$0xff]  ;;  %v1081_v46 = vld [vmem:[%s4210_s4 + $0x1c0] sm:$0xff] }
 0x125   :  { %v3201_v55 = vmax.f32 %v460_v25, %v670_v27  ;;  %v573_v35 = vpop.f32.mrf.mxu1  ;;  %v1042_v25 = vld [vmem:[%s4210_s4 + $0x88] sm:$0xff]  ;;  %v1039_v27 = vld [vmem:[%s4210_s4 + $0x70] sm:$0xff]  ;;  %1233 = vmatpush.msrb.mxu3 %v1087_v50  ;;  %v1097_v18 = vld [vmem:[%s4210_s4 + $0x240] sm:$0xff] }
 0x126   :  { %v574_v12 = vadd.f32 %v573_v35, %v3125_v41  ;;  %v399_v41 = vadd.f32 %v3064_v51, %v364_v48  ;;  %1309 = vmatpush.msrb.mxu2 %v1044_v44  ;;  %v1083_v4 = vld [vmem:[%s4210_s4 + $0x1d0] sm:$0xff]  ;;  %v1036_v35 = vld [vmem:[%s4210_s4 + $0x58] sm:$0xff]  ;;  %v1077_v48 = vld [vmem:[%s4210_s4 + $0x1a0] sm:$0xff] }
 0x127   :  { %805 = vrot.lane.b32.xlu1 %v3201_v55, %s2369_s2  ;;  %809 = vrot.lane.b32.xlu0 %v3198_v28, %s2369_s2  ;;  %v1057_v59 = vld [vmem:[%s4210_s4 + $0x100] sm:$0xff]  ;;  %v1095_v44 = vld [vmem:[%s4210_s4 + $0x230] sm:$0xff] }
 0x128   :  { %1310 = vmatpush.msrb.mxu2 %v1042_v25  ;;  %1234 = vmatpush.msrb.mxu3 %v1085_v62  ;;  %v1093_v25 = vld [vmem:[%s4210_s4 + $0x220] sm:$0xff]  ;;  %v1091_v50 = vld [vmem:[%s4210_s4 + $0x210] sm:$0xff] }
 0x129   :  { %v608_v22 = vpop.f32.mrf.mxu3 }
 0x12a   :  { %v672_v39 = vpop.f32.mrf.mxu2  ;;  %v609_v15 = vadd.f32 %v608_v22, %v574_v12  ;;  %1311 = vmatpush.msrb.mxu2 %v1040_v11  ;;  %1235 = vmatpush.msrb.mxu3 %v1083_v4  ;;  %v1032_v12 = vld [vmem:[%s4210_s4 + $0x38] sm:$0xff]  ;;  %v1029_v22 = vld [vmem:[%s4210_s4 + $0x20] sm:$0xff]  ;;  %v993_v4 = vld [vmem:[%s4209_s3 + $0x1f0] sm:$0xff] }
 0x12b   :  { %v673_v57 = vadd.f32 %v672_v39, %v638_v43  ;;  %v640_v53 = vpop.f32.mrf.mxu0  ;;  %v1035_v43 = vld [vmem:[%s4210_s4 + $0x50] sm:$0xff]  ;;  %v1033_v39 = vld [vmem:[%s4210_s4 + $0x40] sm:$0xff] }
 0x12c   :  { %v641_v24 = vadd.f32 %v640_v53, %v3156_v29  ;;  %v3230_v58 = vmax.f32 %v399_v41, %v609_v15  ;;  %1312 = vmatpush.msrb.mxu2 %v1038_v30  ;;  %1236 = vmatpush.msrb.mxu3 %v1081_v46  ;;  %v1079_v53 = vld [vmem:[%s4210_s4 + $0x1b0] sm:$0xff]  ;;  %v1025_v41 = vld [vmem:[%s4210_s4] sm:$0xff] }
 0x12d   :  { %v3217_v9 = vmax.f32 %v463_v49, %v673_v57  ;;  %v1034_v49 = vld [vmem:[%s4210_s4 + $0x48] sm:$0xff]  ;;  %v1031_v57 = vld [vmem:[%s4210_s4 + $0x30] sm:$0xff] }
 0x12e   :  { %1313 = vmatpush.msrb.mxu2 %v1036_v35  ;;  %1237 = vmatpush.msrb.mxu3 %v1079_v53  ;;  %v1075_v15 = vld [vmem:[%s4210_s4 + $0x190] sm:$0xff]  ;;  %v1084_v53 = vld [vmem:[%s4210_s4 + $0x1d8] sm:$0xff] }
 0x12f   :  { %811 = vrot.lane.b32.xlu1 %v3217_v9, %s2369_s2  ;;  %815 = vrot.lane.b32.xlu0 %v3214_v60, %s2369_s2 }
 0x130   :  { %1314 = vmatpush.msrb.mxu2 %v1034_v49  ;;  %1238 = vmatpush.msrb.mxu3 %v1077_v48 }
 0x132   :  { %v675_v37 = vpop.f32.mrf.mxu2  ;;  %1315 = vmatpush.msrb.mxu2 %v1032_v12  ;;  %1239 = vmatpush.msrb.mxu3 %v1075_v15  ;;  %v989_v12 = vld [vmem:[%s4209_s3 + $0x1d0] sm:$0xff]  ;;  %v987_v15 = vld [vmem:[%s4209_s3 + $0x1c0] sm:$0xff] }
 0x133   :  { %v676_v5 = vadd.f32 %v675_v37, %v641_v24  ;;  %v643_v42 = vpop.f32.mrf.mxu0  ;;  %v1027_v24 = vld [vmem:[%s4210_s4 + $0x10] sm:$0xff]  ;;  %v1028_v37 = vld [vmem:[%s4210_s4 + $0x18] sm:$0xff] }
 0x134   :  { %v644_v54 = vadd.f32 %v643_v42, %v3156_v29  ;;  %v1053_v29 = vld [vmem:[%s4210_s4 + $0xe0] sm:$0xff]  ;;  %1316 = vmatpush.msrb.mxu2 %v1030_v2  ;;  %v1111_v42 = vld [vmem:[%s4210_s4 + $0x2b0] sm:$0xff] }
 0x135   :  { %v3232_v40 = vmax.f32 %v466_v3, %v676_v5  ;;  %1199 = vmatpush.msrb.mxu1 %v1053_v29  ;;  %v1073_v3 = vld [vmem:[%s4210_s4 + $0x180] sm:$0xff]  ;;  %v1026_v5 = vld [vmem:[%s4210_s4 + $0x8] sm:$0xff]  ;;  %1272 = vmatpush.msrb.mxu0 %v1111_v42  ;;  %v1103_v29 = vld [vmem:[%s4210_s4 + $0x270] sm:$0xff] }
 0x136   :  { %1317 = vmatpush.msrb.mxu2 %v1028_v37  ;;  %1240 = vmatpush.msrb.mxu3 %v1073_v3  ;;  %v1080_v42 = vld [vmem:[%s4210_s4 + $0x1b8] sm:$0xff] }
 0x137   :  { %817 = vrot.lane.b32.xlu1 %v3232_v40, %s2369_s2  ;;  %821 = vrot.lane.b32.xlu0 %v3230_v58, %s2369_s2 }
 0x138   :  { %1200 = vmatpush.msrb.mxu1 %v1051_v8  ;;  %1318 = vmatpush.msrb.mxu2 %v1026_v5  ;;  %v1101_v8 = vld [vmem:[%s4210_s4 + $0x260] sm:$0xff] }
 0x139   :  { %1273 = vmatpush.msrb.mxu0 %v1109_v21  ;;  %v985_v21 = vld [vmem:[%s4209_s3 + $0x1b0] sm:$0xff] }
 0x13a   :  { %v678_v51 = vpop.f32.mrf.mxu2  ;;  %1201 = vmatpush.msrb.mxu1 %v1049_v14  ;;  %1456 = vmatpush.msra.mxu2 %v993_v4  ;;  %v955_v4 = vld [vmem:[%s4209_s3 + $0xc0] sm:$0xff] }
 0x13b   :  { %v679_v6 = vadd.f32 %v678_v51, %v644_v54  ;;  %v1071_v54 = vld [vmem:[%s4210_s4 + $0x170] sm:$0xff] }
 0x13c   :  { %1202 = vmatpush.msrb.mxu1 %v1047_v56  ;;  %1241 = vmatpush.msrb.mxu3 %v1071_v54  ;;  %v1107_v51 = vld [vmem:[%s4210_s4 + $0x290] sm:$0xff] }
 0x13d   :  { %v3242_v7 = vmax.f32 %v469_v26, %v679_v6  ;;  %v1069_v26 = vld [vmem:[%s4210_s4 + $0x160] sm:$0xff]  ;;  %1274 = vmatpush.msrb.mxu0 %v1107_v51  ;;  %v1059_v56 = vld [vmem:[%s4210_s4 + $0x110] sm:$0xff] }
 0x13e   :  { %1203 = vmatpush.msrb.mxu1 %v1045_v36  ;;  %1242 = vmatpush.msrb.mxu3 %v1069_v26  ;;  %v1105_v6 = vld [vmem:[%s4210_s4 + $0x280] sm:$0xff]  ;;  %v1076_v26 = vld [vmem:[%s4210_s4 + $0x198] sm:$0xff] }
 0x13f   :  { %823 = vrot.lane.b32.xlu1 %v3242_v7, %s2369_s2  ;;  %1275 = vmatpush.msrb.mxu0 %v1105_v6  ;;  %v983_v51 = vld [vmem:[%s4209_s3 + $0x1a0] sm:$0xff]  ;;  %v981_v6 = vld [vmem:[%s4209_s3 + $0x190] sm:$0xff] }
 0x140   :  { %1204 = vmatpush.msrb.mxu1 %v1043_v19  ;;  %1243 = vmatpush.msrb.mxu3 %v1067_v33 }
 0x141   :  { %1276 = vmatpush.msrb.mxu0 %v1103_v29  ;;  %v790_v14 = vpop.permute.xlu2 %789  ;;  %v1074_v29 = vld [vmem:[%s4210_s4 + $0x188] sm:$0xff] }
 0x142   :  { %1205 = vmatpush.msrb.mxu1 %v1041_v32  ;;  %1244 = vmatpush.msrb.mxu3 %v1065_v23 }
 0x143   :  { %1277 = vmatpush.msrb.mxu0 %v1101_v8 }
 0x144   :  { %1206 = vmatpush.msrb.mxu1 %v1039_v27  ;;  %1245 = vmatpush.msrb.mxu3 %v1063_v38  ;;  %v979_v38 = vld [vmem:[%s4209_s3 + $0x180] sm:$0xff] }
 0x145   :  { %1278 = vmatpush.msrb.mxu0 %v1099_v47  ;;  %v961_v47 = vld [vmem:[%s4209_s3 + $0xf0] sm:$0xff] }
 0x146   :  { %1207 = vmatpush.msrb.mxu1 %v1037_v1  ;;  %1246 = vmatpush.msrb.mxu3 %v1061_v13 }
 0x147   :  { %1279 = vmatpush.msrb.mxu0 %v1097_v18 }
 0x148   :  { %1208 = vmatpush.msrb.mxu1 %v1035_v43  ;;  %1247 = vmatpush.msrb.mxu3 %v1059_v56  ;;  %v1088_v43 = vld [vmem:[%s4210_s4 + $0x1f8] sm:$0xff] }
 0x149   :  { %1280 = vmatpush.msrb.mxu0 %v1095_v44  ;;  %v796_v11 = vpop.permute.xlu2 %795 }
 0x14a   :  { %1209 = vmatpush.msrb.mxu1 %v1033_v39  ;;  %1248 = vmatpush.msrb.mxu3 %v1057_v59  ;;  %v1086_v39 = vld [vmem:[%s4210_s4 + $0x1e8] sm:$0xff]  ;;  %v977_v59 = vld [vmem:[%s4209_s3 + $0x170] sm:$0xff] }
 0x14b   :  { %1281 = vmatpush.msrb.mxu0 %v1093_v25  ;;  %v1070_v25 = vld [vmem:[%s4210_s4 + $0x168] sm:$0xff] }
 0x14c   :  { %1210 = vmatpush.msrb.mxu1 %v1031_v57 }
 0x14d   :  { %1282 = vmatpush.msrb.mxu0 %v1091_v50  ;;  %v1110_v50 = vld [vmem:[%s4210_s4 + $0x2a8] sm:$0xff] }
 0x14e   :  { %1211 = vmatpush.msrb.mxu1 %v1029_v22  ;;  %v2370_v22 = vmov 0.0  }
 0x14f   :  { %910 = vst [vmem:[#allocation3 + $0x90] sm:$0xff] %v2370_v22 }
 0x150   :  { %1212 = vmatpush.msrb.mxu1 %v1027_v24  ;;  %v1082_v24 = vld [vmem:[%s4210_s4 + $0x1c8] sm:$0xff]  ;;  %911 = vst [vmem:[#allocation3 + $0x98] sm:$0xff] %v2370_v22 }
 0x151   :  { %v802_v37 = vpop.permute.xlu2 %801  ;;  %912 = vst.msk [vmem:[#allocation3 + $0xa0] sm:$0xff] %vm825_vm1, %v2370_v22 }
 0x152   :  { %1213 = vmatpush.msrb.mxu1 %v1025_v41  ;;  %1662 = vst [vmem:[#allocation4 + $0x60] sm:$0xff] %v2370_v22 }
 0x153   :  { %1836 = vst [vmem:[#allocation5 + $0x60] sm:$0xff] %v2370_v22 }
 0x154   :  { %1338 = vmatpush.msra.mxu1 %v1088_v43  ;;  %1663 = vst.msk [vmem:[#allocation4 + $0x68] sm:$0xff] %vm1650_vm3, %v2370_v22 }
 0x156   :  { %1339 = vmatpush.msra.mxu1 %v1086_v39  ;;  %v1068_v39 = vld [vmem:[%s4210_s4 + $0x158] sm:$0xff] }
 0x158   :  { %1340 = vmatpush.msra.mxu1 %v1084_v53 }
 0x15a   :  { %1341 = vmatpush.msra.mxu1 %v1082_v24 }
 0x15c   :  { %1342 = vmatpush.msra.mxu1 %v1080_v42 }
 0x178   :  { %v792_v36 = vpop.permute.xlu0 %791 }
 0x179   :  { %v826_v19 = vsel %vm825_vm1, %v790_v14, %v792_v36 }
 0x17a   :  { %v856_v32 = vmax.f32 %v3094_v10, %v826_v19  ;;  %v1089_v10 = vld [vmem:[%s4210_s4 + $0x200] sm:$0xff]  ;;  %v808_v19 = vpop.permute.xlu2 %807 }
 0x17b   :  { %1283 = vmatpush.msrb.mxu0 %v1089_v10  ;;  %v957_v10 = vld [vmem:[%s4209_s3 + $0xd0] sm:$0xff] }
 0x17c   :  { %v3422_v27 = vmax.f32 %v856_v32, 0.0 }
 0x17d   :  { %1421 = vmatpush.msra.mxu0 %v961_v47 }
 0x17e   :  { %892 = vst [vmem:[#allocation3] sm:$0xff] %v3422_v27 }
 0x180   :  { %v798_v1 = vpop.permute.xlu1 %797 }
 0x181   :  { %v828_v62 = vsel %vm825_vm1, %v796_v11, %v798_v1 }
 0x182   :  { %v859_v30 = vmax.f32 %v3103_v20, %v828_v62  ;;  %v991_v20 = vld [vmem:[%s4209_s3 + $0x1e0] sm:$0xff] }
 0x183   :  { %1457 = vmatpush.msra.mxu2 %v991_v20 }
 0x184   :  { %v3439_v35 = vmax.f32 %v859_v30, 0.0 }
 0x185   :  { %v1019_v46 = vld [vmem:[#allocation3] sm:$0xfe]  ;;  %1458 = vmatpush.msra.mxu2 %v989_v12  ;;  %v953_v12 = vld [vmem:[%s4209_s3 + $0xb0] sm:$0xff] }
 0x186   :  { %v1135_v49 = vrot.slane %v1019_v46, 1  ;;  %v1136_v57 = vrot.slane %v3439_v35, 1 }
 0x187   :  { %1459 = vmatpush.msra.mxu2 %v987_v15 }
 0x188   :  { %v1137_v2 = vsel %vm1134_vm2, %v1135_v49, %v1136_v57 }
 0x189   :  { %v794_v48 = vpop.permute.xlu0 %793  ;;  %1214 = vmatmul.f32.vlgmr.msrb.gmra.mxu1 %v1137_v2  ;;  %1319 = vmatmul.f32.vlgmr.msrb.gmra.mxu2 %v1137_v2  ;;  %v973_v2 = vld [vmem:[%s4209_s3 + $0x150] sm:$0xff] }
 0x18a   :  { %v827_v41 = vsel %vm825_vm1, %v792_v36, %v794_v48  ;;  %v858_v3 = vmax.f32 %v3171_v0, %v794_v48  ;;  %1460 = vmatpush.msra.mxu2 %v985_v21  ;;  %v1072_v36 = vld [vmem:[%s4210_s4 + $0x178] sm:$0xff]  ;;  %v971_v21 = vld [vmem:[%s4209_s3 + $0x140] sm:$0xff] }
 0x18b   :  { %v857_v5 = vmax.f32 %v3139_v61, %v827_v41  ;;  %v1078_v61 = vld [vmem:[%s4210_s4 + $0x1a8] sm:$0xff]  ;;  %v1108_v48 = vld [vmem:[%s4210_s4 + $0x298] sm:$0xff] }
 0x18c   :  { %v876_v0 = vmax.f32 %v858_v3, 0.0  ;;  %1343 = vmatpush.msra.mxu1 %v1078_v61  ;;  %1461 = vmatpush.msra.mxu2 %v983_v51  ;;  %v1066_v41 = vld [vmem:[%s4210_s4 + $0x148] sm:$0xff]  ;;  %v949_v61 = vld [vmem:[%s4209_s3 + $0x90] sm:$0xff] }
 0x18d   :  { %v3478_v54 = vmax.f32 %v857_v5, 0.0 }
 0x18e   :  { %894 = vst.msk [vmem:[#allocation3 + $0x10] sm:$0xff] %vm825_vm1, %v876_v0  ;;  %1344 = vmatpush.msra.mxu1 %v1076_v26  ;;  %1462 = vmatpush.msra.mxu2 %v981_v6  ;;  %v1104_v6 = vld [vmem:[%s4210_s4 + $0x278] sm:$0xff] }
 0x18f   :  { %893 = vst [vmem:[#allocation3 + $0x8] sm:$0xff] %v3478_v54 }
 0x190   :  { %1345 = vmatpush.msra.mxu1 %v1074_v29  ;;  %1463 = vmatpush.msra.mxu2 %v979_v38 }
 0x191   :  { %v800_v33 = vpop.permute.xlu1 %799  ;;  %v804_v23 = vpop.permute.xlu0 %803 }
 0x192   :  { %v829_v8 = vsel %vm825_vm1, %v798_v1, %v800_v33  ;;  %v861_v13 = vmax.f32 %v3185_v52, %v800_v33  ;;  %v830_v14 = vsel %vm825_vm1, %v802_v37, %v804_v23  ;;  %v1112_v52 = vld [vmem:[%s4210_s4 + $0x2b8] sm:$0xff]  ;;  %1346 = vmatpush.msra.mxu1 %v1072_v36  ;;  %1464 = vmatpush.msra.mxu2 %v977_v59  ;;  %v975_v1 = vld [vmem:[%s4209_s3 + $0x160] sm:$0xff]  ;;  %v969_v33 = vld [vmem:[%s4209_s3 + $0x130] sm:$0xff] }
 0x193   :  { %v860_v56 = vmax.f32 %v3160_v63, %v829_v8  ;;  %v862_v18 = vmax.f32 %v3112_v31, %v830_v14  ;;  %v959_v31 = vld [vmem:[%s4209_s3 + $0xe0] sm:$0xff]  ;;  %1377 = vmatpush.msra.mxu3 %v1112_v52  ;;  %v1062_v8 = vld [vmem:[%s4210_s4 + $0x128] sm:$0xff] }
 0x194   :  { %v879_v44 = vmax.f32 %v861_v13, 0.0  ;;  %1422 = vmatpush.msra.mxu0 %v959_v31  ;;  %1347 = vmatpush.msra.mxu1 %v1070_v25  ;;  %v951_v37 = vld [vmem:[%s4209_s3 + $0xa0] sm:$0xff] }
 0x195   :  { %v3520_v63 = vmax.f32 %v860_v56, 0.0  ;;  %v3522_v32 = vmax.f32 %v862_v18, 0.0  ;;  %1378 = vmatpush.msra.mxu3 %v1110_v50  ;;  %1465 = vmatpush.msra.mxu2 %v975_v1  ;;  %v1021_v42 = vld [vmem:[#allocation3 + $0x10] sm:$0xfe]  ;;  %v947_v56 = vld [vmem:[%s4209_s3 + $0x80] sm:$0xff] }
 0x196   :  { %897 = vst.msk [vmem:[#allocation3 + $0x28] sm:$0xff] %vm825_vm1, %v879_v44  ;;  %v1020_v11 = vld [vmem:[#allocation3 + $0x8] sm:$0xfe]  ;;  %1423 = vmatpush.msra.mxu0 %v957_v10  ;;  %1348 = vmatpush.msra.mxu1 %v1068_v39  ;;  %v1141_v29 = vrot.slane %v1021_v42, 1  ;;  %v967_v44 = vld [vmem:[%s4209_s3 + $0x120] sm:$0xff]  ;;  %v1060_v10 = vld [vmem:[%s4210_s4 + $0x118] sm:$0xff] }
 0x197   :  { %v1144_v62 = vrot.slane %v3522_v32, 1  ;;  %v1138_v30 = vrot.slane %v1020_v11, 1  ;;  %v1139_v43 = vrot.slane %v3520_v63, 1  ;;  %1379 = vmatpush.msra.mxu3 %v1108_v48  ;;  %1466 = vmatpush.msra.mxu2 %v973_v2  ;;  %v945_v11 = vld [vmem:[%s4209_s3 + $0x70] sm:$0xff]  ;;  %v1096_v42 = vld [vmem:[%s4210_s4 + $0x238] sm:$0xff] }
 0x198   :  { %1424 = vmatpush.msra.mxu0 %v955_v4  ;;  %1349 = vmatpush.msra.mxu1 %v1066_v41  ;;  %v943_v4 = vld [vmem:[%s4209_s3 + $0x60] sm:$0xff] }
 0x199   :  { %v806_v20 = vpop.permute.xlu1 %805  ;;  %v810_v46 = vpop.permute.xlu0 %809  ;;  %v1145_v49 = vsel %vm1134_vm2, %v1136_v57, %v1144_v62  ;;  %v3549_v53 = vsel %vm1134_vm2, %v1138_v30, %v1139_v43  ;;  %1467 = vmatpush.msra.mxu2 %v971_v21  ;;  %v965_v30 = vld [vmem:[%s4209_s3 + $0x110] sm:$0xff] }
 0x19a   :  { %v831_v24 = vsel %vm825_vm1, %v804_v23, %v806_v20  ;;  %v864_v57 = vmax.f32 %v3201_v55, %v806_v20  ;;  %v832_v15 = vsel %vm825_vm1, %v808_v19, %v810_v46  ;;  %1217 = vmatmul.f32.gmra.mxu1 %v1145_v49  ;;  %1249 = vmatmul.f32.vlgmr.msrb.gmra.mxu3 %v3549_v53  ;;  %v1106_v55 = vld [vmem:[%s4210_s4 + $0x288] sm:$0xff]  ;;  %v814_v23 = vpop.permute.xlu2 %813 }
 0x19b   :  { %v863_v3 = vmax.f32 %v3182_v16, %v831_v24  ;;  %v865_v5 = vmax.f32 %v3127_v45, %v832_v15  ;;  %1322 = vmatmul.f32.gmra.mxu2 %v1145_v49  ;;  %1425 = vmatpush.msra.mxu0 %v953_v12  ;;  %v1064_v45 = vld [vmem:[%s4210_s4 + $0x138] sm:$0xff]  ;;  %v1102_v19 = vld [vmem:[%s4210_s4 + $0x268] sm:$0xff]  ;;  %v963_v49 = vld [vmem:[%s4209_s3 + $0x100] sm:$0xff] }
 0x19c   :  { %v882_v0 = vmax.f32 %v864_v57, 0.0  ;;  %1380 = vmatpush.msra.mxu3 %v1106_v55  ;;  %1350 = vmatpush.msra.mxu1 %v1064_v45  ;;  %v941_v15 = vld [vmem:[%s4209_s3 + $0x50] sm:$0xff] }
 0x19d   :  { %v3584_v16 = vmax.f32 %v863_v3, 0.0  ;;  %v3586_v51 = vmax.f32 %v865_v5, 0.0  ;;  %v3588_v26 = vld [vmem:[#allocation3 + $0x28] sm:$0xff]  ;;  %1426 = vmatpush.msra.mxu0 %v951_v37  ;;  %1468 = vmatpush.msra.mxu2 %v969_v33 }
 0x19e   :  { %900 = vst.msk [vmem:[#allocation3 + $0x40] sm:$0xff] %vm825_vm1, %v882_v0  ;;  %v1142_v38 = vrot.slane %v3588_v26, 1  ;;  %1381 = vmatpush.msra.mxu3 %v1104_v6  ;;  %1351 = vmatpush.msra.mxu1 %v1062_v8  ;;  %v1094_v33 = vld [vmem:[%s4210_s4 + $0x228] sm:$0xff] }
 0x19f   :  { %v1150_v13 = vrot.slane %v3586_v51, 1  ;;  %v1146_v14 = vrot.slane %v3584_v16, 1  ;;  %1427 = vmatpush.msra.mxu0 %v949_v61  ;;  %1469 = vmatpush.msra.mxu2 %v967_v44  ;;  %v939_v61 = vld [vmem:[%s4209_s3 + $0x40] sm:$0xff]  ;;  %v1090_v44 = vld [vmem:[%s4210_s4 + $0x208] sm:$0xff] }
 0x1a0   :  { %v3604_v47 = vsel %vm1134_vm2, %v1141_v29, %v1142_v38  ;;  %1382 = vmatpush.msra.mxu3 %v1102_v19  ;;  %1352 = vmatpush.msra.mxu1 %v1060_v10 }
 0x1a1   :  { %v812_v18 = vpop.permute.xlu1 %811  ;;  %2253 = vmatmul.msk.f32.vlgmr.msrb.gmra.mxu0 %vm825_vm1, %v3604_v47  ;;  %v816_v36 = vpop.permute.xlu0 %815  ;;  %v1151_v52 = vsel %vm1134_vm2, %v1144_v62, %v1150_v13  ;;  %v3613_v59 = vsel %vm1134_vm2, %v1139_v43, %v1146_v14  ;;  %1470 = vmatpush.msra.mxu2 %v965_v30 }
 0x1a2   :  { %v833_v31 = vsel %vm825_vm1, %v810_v46, %v812_v18  ;;  %v867_v25 = vmax.f32 %v3217_v9, %v812_v18  ;;  %v834_v50 = vsel %vm825_vm1, %v814_v23, %v816_v36  ;;  %1220 = vmatmul.f32.gmra.mxu1 %v1151_v52  ;;  %1252 = vmatmul.f32.gmra.mxu3 %v3613_v59  ;;  %v1100_v9 = vld [vmem:[%s4210_s4 + $0x258] sm:$0xff]  ;;  %v1098_v46 = vld [vmem:[%s4210_s4 + $0x248] sm:$0xff]  ;;  %v820_v24 = vpop.permute.xlu2 %819  ;;  %v937_v23 = vld [vmem:[%s4209_s3 + $0x30] sm:$0xff] }
 0x1a3   :  { %v866_v1 = vmax.f32 %v3198_v28, %v833_v31  ;;  %v868_v62 = vmax.f32 %v3137_v17, %v834_v50  ;;  %1325 = vmatmul.f32.gmra.mxu2 %v1151_v52  ;;  %1428 = vmatpush.msra.mxu0 %v947_v56  ;;  %v1058_v17 = vld [vmem:[%s4210_s4 + $0x108] sm:$0xff]  ;;  %v935_v18 = vld [vmem:[%s4209_s3 + $0x20] sm:$0xff]  ;;  %v1022_v50 = vld [vmem:[#allocation3 + $0x90] sm:$0x1] }
 0x1a4   :  { %v885_v43 = vmax.f32 %v867_v25, 0.0  ;;  %1383 = vmatpush.msra.mxu3 %v1100_v9  ;;  %1353 = vmatpush.msra.mxu1 %v1058_v17  ;;  %v1168_v30 = vrot.slane %v1022_v50, 1  ;;  %v988_v50 = vld [vmem:[%s4209_s3 + $0x1c8] sm:$0xff] }
 0x1a5   :  { %v3645_v28 = vmax.f32 %v866_v1, 0.0  ;;  %v3647_v39 = vmax.f32 %v868_v62, 0.0  ;;  %v3649_v20 = vld [vmem:[#allocation3 + $0x40] sm:$0xff]  ;;  %1429 = vmatpush.msra.mxu0 %v945_v11  ;;  %1471 = vmatpush.msra.mxu2 %v963_v49  ;;  %v933_v11 = vld [vmem:[%s4209_s3 + $0x10] sm:$0xff]  ;;  %v1023_v49 = vld [vmem:[#allocation3 + $0x98] sm:$0x1] }
 0x1a6   :  { %903 = vst.msk [vmem:[#allocation3 + $0x58] sm:$0xff] %vm825_vm1, %v885_v43  ;;  %v1148_v12 = vrot.slane %v3649_v20, 1  ;;  %1384 = vmatpush.msra.mxu3 %v1098_v46  ;;  %v931_v62 = vld [vmem:[%s4209_s3] sm:$0xff] }
 0x1a7   :  { %v1156_v48 = vrot.slane %v3647_v39, 1  ;;  %v1152_v2 = vrot.slane %v3645_v28, 1  ;;  %1430 = vmatpush.msra.mxu0 %v943_v4 }
 0x1a8   :  { %v3662_v57 = vsel %vm1134_vm2, %v1142_v38, %v1148_v12  ;;  %1385 = vmatpush.msra.mxu3 %v1096_v42  ;;  %v1016_v42 = vld [vmem:[%s4209_s3 + $0x2a8] sm:$0xff] }
 0x1a9   :  { %v818_v37 = vpop.permute.xlu1 %817  ;;  %2254 = vmatmul.msk.f32.gmra.mxu0 %vm825_vm1, %v3662_v57  ;;  %v822_v41 = vpop.permute.xlu0 %821  ;;  %v1157_v3 = vsel %vm1134_vm2, %v1150_v13, %v1156_v48  ;;  %v3671_v5 = vsel %vm1134_vm2, %v1146_v14, %v1152_v2 }
 0x1aa   :  { %v835_v55 = vsel %vm825_vm1, %v816_v36, %v818_v37  ;;  %v870_v21 = vmax.f32 %v3232_v40, %v818_v37  ;;  %v836_v0 = vsel %vm825_vm1, %v820_v24, %v822_v41  ;;  %1223 = vmatmul.f32.gmra.mxu1 %v1157_v3  ;;  %1255 = vmatmul.f32.gmra.mxu3 %v3671_v5  ;;  %v1015_v37 = vld [vmem:[%s4209_s3 + $0x2a0] sm:$0xff] }
 0x1ab   :  { %v869_v45 = vmax.f32 %v3214_v60, %v835_v55  ;;  %v871_v6 = vmax.f32 %v3158_v34, %v836_v0  ;;  %1328 = vmatmul.f32.gmra.mxu2 %v1157_v3  ;;  %1431 = vmatpush.msra.mxu0 %v941_v15  ;;  %v1092_v34 = vld [vmem:[%s4210_s4 + $0x218] sm:$0xff]  ;;  %v1170_v15 = vrot.slane %v1023_v49, 1  ;;  %v1013_v55 = vld [vmem:[%s4209_s3 + $0x290] sm:$0xff] }
 0x1ac   :  { %v888_v40 = vmax.f32 %v870_v21, 0.0  ;;  %1386 = vmatpush.msra.mxu3 %v1094_v33  ;;  %v958_v21 = vld [vmem:[%s4209_s3 + $0xd8] sm:$0xff] }
 0x1ad   :  { %v3691_v29 = vmax.f32 %v869_v45, 0.0  ;;  %v3693_v38 = vmax.f32 %v871_v6, 0.0  ;;  %v3695_v8 = vld [vmem:[#allocation3 + $0x58] sm:$0xff]  ;;  %1432 = vmatpush.msra.mxu0 %v939_v61  ;;  %v1024_v45 = vld [vmem:[#allocation3 + $0xa0] sm:$0x1] }
 0x1ae   :  { %906 = vst.msk [vmem:[#allocation3 + $0x70] sm:$0xff] %vm825_vm1, %v888_v40  ;;  %v1154_v60 = vrot.slane %v3695_v8, 1  ;;  %1387 = vmatpush.msra.mxu3 %v1092_v34  ;;  %v1014_v0 = vld [vmem:[%s4209_s3 + $0x298] sm:$0xff]  ;;  %v992_v40 = vld [vmem:[%s4209_s3 + $0x1e8] sm:$0xff] }
 0x1af   :  { %v1162_v13 = vrot.slane %v3693_v38, 1  ;;  %v1158_v14 = vrot.slane %v3691_v29, 1  ;;  %1433 = vmatpush.msra.mxu0 %v937_v23  ;;  %v994_v33 = vld [vmem:[%s4209_s3 + $0x1f8] sm:$0xff]  ;;  %v1011_v23 = vld [vmem:[%s4209_s3 + $0x280] sm:$0xff]  ;;  %v956_v34 = vld [vmem:[%s4209_s3 + $0xc8] sm:$0xff] }
 0x1b0   :  { %v3705_v56 = vsel %vm1134_vm2, %v1148_v12, %v1154_v60  ;;  %1388 = vmatpush.msra.mxu3 %v1090_v44  ;;  %v1017_v12 = vld [vmem:[%s4209_s3 + $0x2b0] sm:$0xff]  ;;  %v952_v44 = vld [vmem:[%s4209_s3 + $0xa8] sm:$0xff]  ;;  %v1002_v49 = vld [vmem:[%s4209_s3 + $0x238] sm:$0xff] }
 0x1b1   :  { %v824_v36 = vpop.permute.xlu1 %823  ;;  %2255 = vmatmul.msk.f32.gmra.mxu0 %vm825_vm1, %v3705_v56  ;;  %v1163_v52 = vsel %vm1134_vm2, %v1156_v48, %v1162_v13  ;;  %v3714_v19 = vsel %vm1134_vm2, %v1152_v2, %v1158_v14  ;;  %v1169_v17 = vsel %vm1134_vm2, %v1162_v13, %v1168_v30  ;;  %v962_v48 = vld [vmem:[%s4209_s3 + $0xf8] sm:$0xff]  ;;  %1495 = vmatpush.msrb.mxu1 %v1017_v12  ;;  %v1003_v30 = vld [vmem:[%s4209_s3 + $0x240] sm:$0xff] }
 0x1b2   :  { %v837_v31 = vsel %vm825_vm1, %v822_v41, %v824_v36  ;;  %v873_v25 = vmax.f32 %v3242_v7, %v824_v36  ;;  %1226 = vmatmul.f32.gmra.mxu1 %v1163_v52  ;;  %1258 = vmatmul.f32.gmra.mxu3 %v3714_v19  ;;  %v1018_v2 = vld [vmem:[%s4209_s3 + $0x2b8] sm:$0xff]  ;;  %v960_v41 = vld [vmem:[%s4209_s3 + $0xe8] sm:$0xff] }
 0x1b3   :  { %v872_v10 = vmax.f32 %v3230_v58, %v837_v31  ;;  %1331 = vmatmul.f32.gmra.mxu2 %v1163_v52  ;;  %1434 = vmatpush.msra.mxu0 %v935_v18  ;;  %v954_v13 = vld [vmem:[%s4209_s3 + $0xb8] sm:$0xff]  ;;  %v1007_v52 = vld [vmem:[%s4209_s3 + $0x260] sm:$0xff]  ;;  %v1008_v31 = vld [vmem:[%s4209_s3 + $0x268] sm:$0xff] }
 0x1b4   :  { %v891_v1 = vmax.f32 %v873_v25, 0.0  ;;  %1526 = vmatpush.msrb.mxu3 %v962_v48  ;;  %1600 = vmatpush.msrb.mxu2 %v1018_v2  ;;  %v990_v18 = vld [vmem:[%s4209_s3 + $0x1d8] sm:$0xff]  ;;  %v999_v48 = vld [vmem:[%s4209_s3 + $0x220] sm:$0xff]  ;;  %v944_v2 = vld [vmem:[%s4209_s3 + $0x68] sm:$0xff] }
 0x1b5   :  { %v3729_v9 = vmax.f32 %v872_v10, 0.0  ;;  %v3731_v7 = vld [vmem:[#allocation3 + $0x70] sm:$0xff]  ;;  %1435 = vmatpush.msra.mxu0 %v933_v11  ;;  %1496 = vmatpush.msrb.mxu1 %v1015_v37  ;;  %v1010_v36 = vld [vmem:[%s4209_s3 + $0x278] sm:$0xff]  ;;  %v1000_v37 = vld [vmem:[%s4209_s3 + $0x228] sm:$0xff] }
 0x1b6   :  { %909 = vst.msk [vmem:[#allocation3 + $0x88] sm:$0xff] %vm825_vm1, %v891_v1  ;;  %v1160_v43 = vrot.slane %v3731_v7, 1  ;;  %1527 = vmatpush.msrb.mxu3 %v960_v41  ;;  %1601 = vmatpush.msrb.mxu2 %v1016_v42  ;;  %v1005_v11 = vld [vmem:[%s4209_s3 + $0x250] sm:$0xff]  ;;  %v950_v10 = vld [vmem:[%s4209_s3 + $0x98] sm:$0xff]  ;;  %v995_v42 = vld [vmem:[%s4209_s3 + $0x200] sm:$0xff] }
 0x1b7   :  { %v1164_v58 = vrot.slane %v3729_v9, 1  ;;  %1436 = vmatpush.msra.mxu0 %v931_v62  ;;  %1497 = vmatpush.msrb.mxu1 %v1013_v55  ;;  %v986_v1 = vld [vmem:[%s4209_s3 + $0x1b8] sm:$0xff]  ;;  %v997_v41 = vld [vmem:[%s4209_s3 + $0x210] sm:$0xff]  ;;  %v940_v55 = vld [vmem:[%s4209_s3 + $0x48] sm:$0xff] }
 0x1b8   :  { %v3737_v4 = vsel %vm1134_vm2, %v1154_v60, %v1160_v43  ;;  %1528 = vmatpush.msrb.mxu3 %v958_v21  ;;  %1602 = vmatpush.msrb.mxu2 %v1014_v0  ;;  %v1012_v60 = vld [vmem:[%s4209_s3 + $0x288] sm:$0xff]  ;;  %v1006_v62 = vld [vmem:[%s4209_s3 + $0x258] sm:$0xff] }
 0x1b9   :  { %2256 = vmatmul.msk.f32.gmra.mxu0 %vm825_vm1, %v3737_v4  ;;  %v3743_v46 = vsel %vm1134_vm2, %v1158_v14, %v1164_v58  ;;  %v3782_v6 = vsel %vm1134_vm2, %v1164_v58, %v1170_v15  ;;  %v1172_v14 = vrot.slane %v1024_v45, 1  ;;  %1498 = vmatpush.msrb.mxu1 %v1011_v23  ;;  %v1001_v58 = vld [vmem:[%s4209_s3 + $0x230] sm:$0xff]  ;;  %v982_v12 = vld [vmem:[%s4209_s3 + $0x198] sm:$0xff]  ;;  %v980_v15 = vld [vmem:[%s4209_s3 + $0x188] sm:$0xff] }
 0x1ba   :  { %1229 = vmatmul.f32.gmra.mxu1 %v1169_v17  ;;  %1261 = vmatmul.f32.gmra.mxu3 %v3743_v46  ;;  %v996_v21 = vld [vmem:[%s4209_s3 + $0x208] sm:$0xff]  ;;  %v938_v45 = vld [vmem:[%s4209_s3 + $0x38] sm:$0xff] }
 0x1bb   :  { %1334 = vmatmul.f32.gmra.mxu2 %v1169_v17  ;;  %1561 = vmatpush.msrb.mxu0 %v994_v33  ;;  %v946_v17 = vld [vmem:[%s4209_s3 + $0x78] sm:$0xff]  ;;  %v976_v0 = vld [vmem:[%s4209_s3 + $0x168] sm:$0xff] }
 0x1bc   :  { %1529 = vmatpush.msrb.mxu3 %v956_v34  ;;  %1603 = vmatpush.msrb.mxu2 %v1012_v60  ;;  %v974_v33 = vld [vmem:[%s4209_s3 + $0x158] sm:$0xff]  ;;  %v972_v23 = vld [vmem:[%s4209_s3 + $0x148] sm:$0xff] }
 0x1bd   :  { %v3755_v24 = vld [vmem:[#allocation3 + $0x88] sm:$0xff]  ;;  %1562 = vmatpush.msrb.mxu0 %v992_v40 }
 0x1be   :  { %v1166_v3 = vrot.slane %v3755_v24, 1  ;;  %1530 = vmatpush.msrb.mxu3 %v954_v13  ;;  %1604 = vmatpush.msrb.mxu2 %v1010_v36  ;;  %v936_v40 = vld [vmem:[%s4209_s3 + $0x28] sm:$0xff] }
 0x1bf   :  { %1563 = vmatpush.msrb.mxu0 %v990_v18  ;;  %v932_v34 = vld [vmem:[%s4209_s3 + $0x8] sm:$0xff] }
 0x1c0   :  { %v3777_v61 = vsel %vm1134_vm2, %v1160_v43, %v1166_v3  ;;  %v3824_v25 = vsel %vm1134_vm2, %v1166_v3, %v1172_v14  ;;  %1531 = vmatpush.msrb.mxu3 %v952_v44  ;;  %1605 = vmatpush.msrb.mxu2 %v1008_v31  ;;  %v1004_v43 = vld [vmem:[%s4209_s3 + $0x248] sm:$0xff]  ;;  %v998_v3 = vld [vmem:[%s4209_s3 + $0x218] sm:$0xff] }
 0x1c1   :  { %2257 = vmatmul.msk.f32.gmra.mxu0 %vm825_vm1, %v3777_v61  ;;  %v968_v60 = vld [vmem:[%s4209_s3 + $0x128] sm:$0xff] }
 0x1c2   :  { %1264 = vmatmul.f32.gmra.mxu3 %v3782_v6  ;;  %1354 = vmatmul.f32.vlgmr.msra.gmra.mxu1 %v3549_v53  ;;  %v1009_v53 = vld [vmem:[%s4209_s3 + $0x270] sm:$0xff] }
 0x1c3   :  { %1472 = vmatmul.f32.vlgmr.msra.gmra.mxu2 %v3478_v54  ;;  %1499 = vmatpush.msrb.mxu1 %v1009_v53  ;;  %v966_v53 = vld [vmem:[%s4209_s3 + $0x118] sm:$0xff] }
 0x1c4   :  { %1564 = vmatpush.msrb.mxu0 %v988_v50  ;;  %1532 = vmatpush.msrb.mxu3 %v950_v10 }
 0x1c5   :  { %1500 = vmatpush.msrb.mxu1 %v1007_v52  ;;  %1606 = vmatpush.msrb.mxu2 %v1006_v62 }
 0x1c6   :  { %1565 = vmatpush.msrb.mxu0 %v986_v1 }
 0x1c7   :  { %1501 = vmatpush.msrb.mxu1 %v1005_v11  ;;  %1607 = vmatpush.msrb.mxu2 %v1004_v43 }
 0x1c9   :  { %2258 = vmatmul.msk.f32.gmra.mxu0 %vm825_vm1, %v3824_v25  ;;  %1502 = vmatpush.msrb.mxu1 %v1003_v30 }
 0x1ca   :  { %1357 = vmatmul.f32.gmra.mxu1 %v3613_v59  ;;  %2259 = vmatmul.msk.f32.vlgmr.msra.gmra.mxu3 %vm825_vm1, %v3604_v47  ;;  %v948_v59 = vld [vmem:[%s4209_s3 + $0x88] sm:$0xff] }
 0x1cb   :  { %1475 = vmatmul.f32.gmra.mxu2 %v3520_v63  ;;  %v984_v47 = vld [vmem:[%s4209_s3 + $0x1a8] sm:$0xff]  ;;  %1533 = vmatpush.msrb.mxu3 %v948_v59 }
 0x1cc   :  { %1566 = vmatpush.msrb.mxu0 %v984_v47  ;;  %1503 = vmatpush.msrb.mxu1 %v1001_v58 }
 0x1cd   :  { %1534 = vmatpush.msrb.mxu3 %v946_v17  ;;  %1608 = vmatpush.msrb.mxu2 %v1002_v49 }
 0x1ce   :  { %1567 = vmatpush.msrb.mxu0 %v982_v12  ;;  %1504 = vmatpush.msrb.mxu1 %v999_v48 }
 0x1cf   :  { %1535 = vmatpush.msrb.mxu3 %v944_v2  ;;  %1609 = vmatpush.msrb.mxu2 %v1000_v37 }
 0x1d0   :  { %1568 = vmatpush.msrb.mxu0 %v980_v15  ;;  %1505 = vmatpush.msrb.mxu1 %v997_v41 }
 0x1d1   :  { %1437 = vmatmul.f32.vlgmr.msra.gmra.mxu0 %v3422_v27  ;;  %1610 = vmatpush.msrb.mxu2 %v998_v3 }
 0x1d2   :  { %1360 = vmatmul.f32.gmra.mxu1 %v3671_v5  ;;  %2260 = vmatmul.msk.f32.gmra.mxu3 %vm825_vm1, %v3662_v57  ;;  %v942_v5 = vld [vmem:[%s4209_s3 + $0x58] sm:$0xff] }
 0x1d3   :  { %1478 = vmatmul.f32.gmra.mxu2 %v3584_v16  ;;  %v978_v57 = vld [vmem:[%s4209_s3 + $0x178] sm:$0xff]  ;;  %1536 = vmatpush.msrb.mxu3 %v942_v5 }
 0x1d4   :  { %1569 = vmatpush.msrb.mxu0 %v978_v57  ;;  %1506 = vmatpush.msrb.mxu1 %v995_v42 }
 0x1d5   :  { %1537 = vmatpush.msrb.mxu3 %v940_v55  ;;  %1611 = vmatpush.msrb.mxu2 %v996_v21 }
 0x1d6   :  { %1570 = vmatpush.msrb.mxu0 %v976_v0 }
 0x1d7   :  { %1538 = vmatpush.msrb.mxu3 %v938_v45 }
 0x1d8   :  { %1571 = vmatpush.msrb.mxu0 %v974_v33 }
 0x1d9   :  { %1440 = vmatmul.f32.gmra.mxu0 %v3439_v35  ;;  %1539 = vmatpush.msrb.mxu3 %v936_v40 }
 0x1da   :  { %1363 = vmatmul.f32.gmra.mxu1 %v3714_v19  ;;  %2261 = vmatmul.msk.f32.gmra.mxu3 %vm825_vm1, %v3705_v56  ;;  %v934_v56 = vld [vmem:[%s4209_s3 + $0x18] sm:$0xff] }
 0x1db   :  { %1481 = vmatmul.f32.gmra.mxu2 %v3645_v28  ;;  %1572 = vmatpush.msrb.mxu0 %v972_v23  ;;  %v970_v19 = vld [vmem:[%s4209_s3 + $0x138] sm:$0xff] }
 0x1dc   :  { %1540 = vmatpush.msrb.mxu3 %v934_v56  ;;  %v1631_v56 = vld [vmem:[%s4211_s5] sm:$0x3]  ;;  %s2371_s5 = smov 79  }
 0x1dd   :  { %1573 = vmatpush.msrb.mxu0 %v970_v19 }
 0x1de   :  { %1541 = vmatpush.msrb.mxu3 %v932_v34 }
 0x1df   :  { %1574 = vmatpush.msrb.mxu0 %v968_v60 }
 0x1e1   :  { %1443 = vmatmul.f32.gmra.mxu0 %v3522_v32 }
 0x1e2   :  { %1366 = vmatmul.f32.gmra.mxu1 %v3743_v46  ;;  %2262 = vmatmul.msk.f32.gmra.mxu3 %vm825_vm1, %v3737_v4  ;;  %v964_v46 = vld [vmem:[%s4209_s3 + $0x108] sm:$0xff]  ;;  %v915_v4 = vld [vmem:[#allocation3 + $0x10] sm:$0xff] }
 0x1e3   :  { %1484 = vmatmul.f32.gmra.mxu2 %v3691_v29  ;;  %1575 = vmatpush.msrb.mxu0 %v966_v53 }
 0x1e5   :  { %1576 = vmatpush.msrb.mxu0 %v964_v46  ;;  %v4036_v46 = vperm.slane %v1631_v56, 0 }
 0x1e9   :  { %1446 = vmatmul.f32.gmra.mxu0 %v3586_v51 }
 0x1ea   :  { %1369 = vmatmul.f32.gmra.mxu1 %v3782_v6  ;;  %2263 = vmatmul.msk.f32.gmra.mxu3 %vm825_vm1, %v3777_v61 }
 0x1eb   :  { %1487 = vmatmul.f32.gmra.mxu2 %v3729_v9 }
 0x1f1   :  { %1449 = vmatmul.f32.gmra.mxu0 %v3647_v39 }
 0x1f2   :  { %2264 = vmatmul.msk.f32.gmra.mxu3 %vm825_vm1, %v3824_v25  ;;  %2265 = vmatmul.msk.f32.vlgmr.msrb.gmra.mxu1 %vm825_vm1, %v915_v4 }
 0x1f3   :  { %2271 = vmatmul.msk.f32.vlgmr.msrb.gmra.mxu2 %vm825_vm1, %v915_v4 }
 0x1f9   :  { %1452 = vmatmul.f32.gmra.mxu0 %v3693_v38 }
 0x1fa   :  { %2266 = vmatmul.msk.f32.gmra.mxu1 %vm825_vm1, %v3588_v26  ;;  %1542 = vmatmul.f32.vlgmr.msrb.gmra.mxu3 %v3422_v27 }
 0x1fb   :  { %2272 = vmatmul.msk.f32.gmra.mxu2 %vm825_vm1, %v3588_v26 }
 0x201   :  { %1577 = vmatmul.f32.vlgmr.msrb.gmra.mxu0 %v3478_v54 }
 0x202   :  { %2267 = vmatmul.msk.f32.gmra.mxu1 %vm825_vm1, %v3649_v20  ;;  %1545 = vmatmul.f32.gmra.mxu3 %v3439_v35 }
 0x203   :  { %2273 = vmatmul.msk.f32.gmra.mxu2 %vm825_vm1, %v3649_v20 }
 0x206   :  { %v1215_v27 = vpop.f32.mrf.mxu1 }
 0x209   :  { %1580 = vmatmul.f32.gmra.mxu0 %v3520_v63 }
 0x20a   :  { %2268 = vmatmul.msk.f32.gmra.mxu1 %vm825_vm1, %v3695_v8  ;;  %1548 = vmatmul.f32.gmra.mxu3 %v3522_v32 }
 0x20b   :  { %2274 = vmatmul.msk.f32.gmra.mxu2 %vm825_vm1, %v3695_v8 }
 0x20c   :  { %v3986_v35 = vpop.f32.mrf.mxu2 }
 0x211   :  { %1583 = vmatmul.f32.gmra.mxu0 %v3584_v16 }
 0x212   :  { %2269 = vmatmul.msk.f32.gmra.mxu1 %vm825_vm1, %v3731_v7  ;;  %1551 = vmatmul.f32.gmra.mxu3 %v3586_v51 }
 0x213   :  { %2275 = vmatmul.msk.f32.gmra.mxu2 %vm825_vm1, %v3731_v7 }
 0x217   :  { %v1218_v54 = vpop.f32.mrf.mxu1 }
 0x219   :  { %1586 = vmatmul.f32.gmra.mxu0 %v3645_v28 }
 0x21a   :  { %2270 = vmatmul.msk.f32.gmra.mxu1 %vm825_vm1, %v3755_v24  ;;  %1554 = vmatmul.f32.gmra.mxu3 %v3647_v39 }
 0x21b   :  { %2276 = vmatmul.msk.f32.gmra.mxu2 %vm825_vm1, %v3755_v24 }
 0x21d   :  { %v1250_v63 = vpop.f32.mrf.mxu3 }
 0x21e   :  { %v1285_v32 = vpop.f32.mrf.mxu0  ;;  %v1251_v16 = vadd.f32 %v1250_v63, %v1215_v27  ;;  %v3994_v51 = vpop.f32.mrf.mxu2 }
 0x21f   :  { %v1221_v26 = vpop.f32.mrf.mxu1 }
 0x220   :  { %v1286_v20 = vadd.f32 %v1285_v32, %v1251_v16 }
 0x221   :  { %1589 = vmatmul.f32.gmra.mxu0 %v3691_v29 }
 0x222   :  { %1557 = vmatmul.f32.gmra.mxu3 %v3693_v38 }
 0x225   :  { %v1253_v28 = vpop.f32.mrf.mxu3 }
 0x226   :  { %v1288_v8 = vpop.f32.mrf.mxu0  ;;  %v1254_v7 = vadd.f32 %v1253_v28, %v1218_v54  ;;  %v3998_v61 = vpop.f32.mrf.mxu2 }
 0x227   :  { %v1224_v39 = vpop.f32.mrf.mxu1 }
 0x228   :  { %v1289_v6 = vadd.f32 %v1288_v8, %v1254_v7 }
 0x229   :  { %1592 = vmatmul.f32.gmra.mxu0 %v3729_v9 }
 0x22d   :  { %v1256_v24 = vpop.f32.mrf.mxu3 }
 0x22e   :  { %v1291_v13 = vpop.f32.mrf.mxu0  ;;  %v1257_v14 = vadd.f32 %v1256_v24, %v1221_v26  ;;  %v4001_v18 = vpop.f32.mrf.mxu2 }
 0x22f   :  { %v1227_v36 = vpop.f32.mrf.mxu1 }
 0x230   :  { %v1292_v52 = vadd.f32 %v1291_v13, %v1257_v14 }
 0x235   :  { %v1259_v44 = vpop.f32.mrf.mxu3 }
 0x236   :  { %v1294_v29 = vpop.f32.mrf.mxu0  ;;  %v1260_v31 = vadd.f32 %v1259_v44, %v1224_v39  ;;  %v4003_v38 = vpop.f32.mrf.mxu2 }
 0x237   :  { %v1230_v25 = vpop.f32.mrf.mxu1 }
 0x238   :  { %v4005_v50 = vadd.f32 %v1294_v29, %v1260_v31 }
 0x23d   :  { %v1262_v11 = vpop.f32.mrf.mxu3 }
 0x23e   :  { %v1297_v10 = vpop.f32.mrf.mxu0  ;;  %v1263_v1 = vadd.f32 %v1262_v11, %v1227_v36  ;;  %v4007_v62 = vpop.f32.mrf.mxu2 }
 0x23f   :  { %v1355_v9 = vpop.f32.mrf.mxu1 }
 0x240   :  { %v4009_v30 = vadd.f32 %v1297_v10, %v1263_v1  ;;  %v1356_v8 = vadd.f32 %v1355_v9, %v3986_v35  ;;  %v4046_v1 = vperm.slane %v1631_v56, 1 }
 0x245   :  { %v1265_v59 = vpop.f32.mrf.mxu3 }
 0x246   :  { %v1300_v47 = vpop.f32.mrf.mxu0  ;;  %v1266_v43 = vadd.f32 %v1265_v59, %v1230_v25  ;;  %v1473_v58 = vpop.f32.mrf.mxu2 }
 0x247   :  { %v1358_v17 = vpop.f32.mrf.mxu1 }
 0x248   :  { %v4011_v49 = vadd.f32 %v1300_v47, %v1266_v43  ;;  %v1359_v9 = vadd.f32 %v1358_v17, %v3994_v51 }
 0x24d   :  { %v1390_v12 = vpop.f32.mrf.mxu3 }
 0x24e   :  { %v1438_v48 = vpop.f32.mrf.mxu0  ;;  %v1476_v2 = vpop.f32.mrf.mxu2  ;;  %v1391_v13 = vadd.f32 %v1390_v12, %v1356_v8 }
 0x24f   :  { %v4013_v15 = vpop.f32.mrf.mxu1  ;;  %v1439_v23 = vadd.f32 %v1438_v48, %v1286_v20 }
 0x250   :  { %v1362_v17 = vadd.f32 %v4013_v15, %v3998_v61 }
 0x251   :  { %v1474_v53 = vadd.f32 %v1473_v58, %v1439_v23 }
 0x255   :  { %v1393_v37 = vpop.f32.mrf.mxu3 }
 0x256   :  { %v1441_v41 = vpop.f32.mrf.mxu0  ;;  %v1479_v5 = vpop.f32.mrf.mxu2  ;;  %v1394_v12 = vadd.f32 %v1393_v37, %v1359_v9 }
 0x257   :  { %v4015_v57 = vpop.f32.mrf.mxu1  ;;  %v1442_v27 = vadd.f32 %v1441_v41, %v1289_v6 }
 0x259   :  { %v1477_v16 = vadd.f32 %v1476_v2, %v1442_v27 }
 0x25d   :  { %v4017_v3 = vpop.f32.mrf.mxu3 }
 0x25e   :  { %v1444_v42 = vpop.f32.mrf.mxu0  ;;  %v1482_v55 = vpop.f32.mrf.mxu2 }
 0x25f   :  { %v4019_v21 = vpop.f32.mrf.mxu1  ;;  %v1445_v7 = vadd.f32 %v1444_v42, %v1292_v52 }
 0x261   :  { %v1480_v31 = vadd.f32 %v1479_v5, %v1445_v7 }
 0x265   :  { %v4021_v0 = vpop.f32.mrf.mxu3 }
 0x266   :  { %v1447_v45 = vpop.f32.mrf.mxu0  ;;  %v4025_v33 = vpop.f32.mrf.mxu2 }
 0x267   :  { %v4027_v40 = vpop.f32.mrf.mxu1  ;;  %v1448_v47 = vadd.f32 %v1447_v45, %v4005_v50 }
 0x269   :  { %v1483_v23 = vadd.f32 %v1482_v55, %v1448_v47 }
 0x26d   :  { %v4032_v19 = vpop.f32.mrf.mxu3 }
 0x26e   :  { %v1450_v34 = vpop.f32.mrf.mxu0  ;;  %v4034_v60 = vpop.f32.mrf.mxu2 }
 0x26f   :  { %v1508_v4 = vpop.f32.mrf.mxu1  ;;  %v1451_v37 = vadd.f32 %v1450_v34, %v4009_v30 }
 0x270   :  { %v1509_v22 = vadd.f32 %v1508_v4, %v1474_v53 }
 0x271   :  { %v1486_v8 = vadd.f32 %v4025_v33, %v1451_v37 }
 0x272   :  { %v1637_v54 = vadd.f32 %v4036_v46, %v1509_v22 }
 0x274   :  { %1649 = vst [vmem:[#allocation4] sm:$0xff] %v1637_v54 }
 0x275   :  { %v4039_v63 = vpop.f32.mrf.mxu3 }
 0x276   :  { %v1453_v32 = vpop.f32.mrf.mxu0  ;;  %v1613_v26 = vpop.f32.mrf.mxu2 }
 0x277   :  { %v1511_v20 = vpop.f32.mrf.mxu1 }
 0x278   :  { %v1512_v28 = vadd.f32 %v1511_v20, %v1477_v16 }
 0x27a   :  { %v1639_v39 = vadd.f32 %v4036_v46, %v1512_v28 }
 0x27b   :  { %v1676_v24 = vld [vmem:[#allocation4] sm:$0xfe] }
 0x27c   :  { %v1694_v14 = vrot.slane %v1676_v24, 1  ;;  %v1695_v36 = vrot.slane %v1639_v39, 1 }
 0x27d   :  { %v1543_v6 = vpop.f32.mrf.mxu3 }
 0x27e   :  { %v1578_v44 = vpop.f32.mrf.mxu0  ;;  %v1544_v29 = vadd.f32 %v1543_v6, %v1391_v13  ;;  %v1696_v25 = vsel %vm1134_vm2, %v1694_v14, %v1695_v36  ;;  %v1616_v52 = vpop.f32.mrf.mxu2 }
 0x27f   :  { %v1514_v11 = vpop.f32.mrf.mxu1  ;;  %v4044_v10 = vmax.f32 %v1637_v54, %v1696_v25  ;;  %v1397_v54 = vadd.f32 %v4017_v3, %v1362_v17  ;;  %v1365_v3 = vadd.f32 %v4015_v57, %v4001_v18 }
 0x280   :  { %v1579_v59 = vadd.f32 %v1578_v44, %v1544_v29  ;;  %v1515_v35 = vadd.f32 %v1514_v11, %v1480_v31 }
 0x281   :  { %1756 = vrot.lane.b32.xlu2 %v4044_v10, %s2371_s5  ;;  %v1400_v33 = vadd.f32 %v4021_v0, %v1365_v3 }
 0x282   :  { %v1614_v43 = vadd.f32 %v1613_v26, %v1579_v59  ;;  %v1641_v58 = vadd.f32 %v4036_v46, %v1515_v35 }
 0x284   :  { %v1638_v48 = vadd.f32 %v4046_v1, %v1614_v43  ;;  %v1700_v2 = vrot.slane %v1641_v58, 1 }
 0x285   :  { %v1546_v41 = vpop.f32.mrf.mxu3 }
 0x286   :  { %1651 = vst.msk [vmem:[#allocation4 + $0x8] sm:$0xff] %vm1650_vm3, %v1638_v48  ;;  %v1581_v5 = vpop.f32.mrf.mxu0  ;;  %v1547_v42 = vadd.f32 %v1546_v41, %v1394_v12  ;;  %v1701_v56 = vsel %vm1134_vm2, %v1695_v36, %v1700_v2  ;;  %v1619_v27 = vpop.f32.mrf.mxu2 }
 0x287   :  { %v1517_v53 = vpop.f32.mrf.mxu1  ;;  %v4056_v4 = vmax.f32 %v1639_v39, %v1701_v56  ;;  %v1454_v39 = vadd.f32 %v1453_v32, %v4011_v49 }
 0x288   :  { %v1582_v51 = vadd.f32 %v1581_v5, %v1547_v42  ;;  %v1518_v50 = vadd.f32 %v1517_v53, %v1483_v23 }
 0x289   :  { %v1489_v31 = vadd.f32 %v4034_v60, %v1454_v39  ;;  %v1368_v60 = vadd.f32 %v4019_v21, %v4003_v38  ;;  %v1679_v39 = vld [vmem:[#allocation4 + $0x68] sm:$0x1] }
 0x28a   :  { %v1617_v45 = vadd.f32 %v1616_v52, %v1582_v51  ;;  %v1643_v22 = vadd.f32 %v4036_v46, %v1518_v50  ;;  %v1718_v3 = vrot.slane %v1679_v39, 1  ;;  %v1899_v39 = vld [vmem:[#allocation9 + $0xa0] sm:$0xff] }
 0x28b   :  { %v1403_v48 = vadd.f32 %v4032_v19, %v1368_v60  ;;  %v1371_v19 = vadd.f32 %v4027_v40, %v4007_v62  ;;  %v1861_v60 = vld [vmem:[#allocation7 + $0x58] sm:$0xff] }
 0x28c   :  { %v1640_v55 = vadd.f32 %v4046_v1, %v1617_v45  ;;  %v1704_v16 = vrot.slane %v1643_v22, 1 }
 0x28d   :  { %v1549_v26 = vpop.f32.mrf.mxu3  ;;  %v1677_v14 = vld [vmem:[#allocation4 + $0x8] sm:$0xfe]  ;;  %v1406_v45 = vadd.f32 %v4039_v63, %v1371_v19  ;;  %v1870_v19 = vld [vmem:[#allocation7 + $0xa0] sm:$0xff] }
 0x28e   :  { %1653 = vst.msk [vmem:[#allocation4 + $0x18] sm:$0xff] %vm1650_vm3, %v1640_v55  ;;  %v1584_v20 = vpop.f32.mrf.mxu0  ;;  %v1550_v28 = vadd.f32 %v1549_v26, %v1397_v54  ;;  %v1705_v61 = vsel %vm1134_vm2, %v1700_v2, %v1704_v16  ;;  %v1622_v44 = vpop.f32.mrf.mxu2  ;;  %v1697_v11 = vrot.slane %v1677_v14, 1  ;;  %v1665_v9 = vld [vmem:[#allocation4 + $0x8] sm:$0xff]  ;;  %v1678_v14 = vld [vmem:[#allocation4 + $0x60] sm:$0x1] }
 0x28f   :  { %v1520_v15 = vpop.f32.mrf.mxu1  ;;  %v4067_v30 = vmax.f32 %v1641_v58, %v1705_v61 }
 0x290   :  { %v1585_v34 = vadd.f32 %v1584_v20, %v1550_v28  ;;  %v1521_v7 = vadd.f32 %v1520_v15, %v1486_v8 }
 0x291   :  { %1764 = vrot.lane.b32.xlu2 %v4067_v30, %s2371_s5 }
 0x292   :  { %v1620_v24 = vadd.f32 %v1619_v27, %v1585_v34  ;;  %v1645_v13 = vadd.f32 %v4036_v46, %v1521_v7 }
 0x294   :  { %v1642_v36 = vadd.f32 %v4046_v1, %v1620_v24  ;;  %v1708_v6 = vrot.slane %v1645_v13, 1 }
 0x295   :  { %v1552_v29 = vpop.f32.mrf.mxu3  ;;  %v1667_v49 = vld [vmem:[#allocation4 + $0x18] sm:$0xff] }
 0x296   :  { %1655 = vst.msk [vmem:[#allocation4 + $0x28] sm:$0xff] %vm1650_vm3, %v1642_v36  ;;  %v1587_v32 = vpop.f32.mrf.mxu0  ;;  %v1553_v25 = vadd.f32 %v1552_v29, %v1400_v33  ;;  %v1698_v18 = vrot.slane %v1667_v49, 1  ;;  %v1709_v57 = vsel %vm1134_vm2, %v1704_v16, %v1708_v6  ;;  %v1625_v21 = vpop.f32.mrf.mxu2 }
 0x297   :  { %v1523_v59 = vpop.f32.mrf.mxu1  ;;  %v4080_v35 = vmax.f32 %v1643_v22, %v1709_v57  ;;  %v1893_v57 = vld [vmem:[#allocation9 + $0x70] sm:$0xff] }
 0x298   :  { %v1588_v0 = vadd.f32 %v1587_v32, %v1553_v25  ;;  %v1524_v52 = vadd.f32 %v1523_v59, %v1489_v31  ;;  %v1699_v47 = vsel %vm1134_vm2, %v1697_v11, %v1698_v18  ;;  %v1864_v32 = vld [vmem:[#allocation7 + $0x70] sm:$0xff]  ;;  %v2312_v25 = vld [vmem:[#allocation3 + $0x90] sm:$0xff]  ;;  %v1874_v59 = vld [vmem:[#allocation7 + $0xc0] sm:$0xf] }
 0x299   :  { %v4083_v43 = vmax.f32 %v1665_v9, %v1699_v47  ;;  %1837 = vst.msk [vmem:[#allocation5 + $0x68] sm:$0xff] %vm1824_vm4, %v2312_v25  ;;  %v1863_v11 = vld [vmem:[#allocation7 + $0x68] sm:$0xff]  ;;  %2284 = vmatpush.msk.msra.mxu2 %vm1963_vm5, %v1874_v59  ;;  %v1873_v9 = vld [vmem:[#allocation7 + $0xb8] sm:$0xff]  ;;  %v1872_v47 = vld [vmem:[#allocation7 + $0xb0] sm:$0xff] }
 0x29a   :  { %v1623_v58 = vadd.f32 %v1622_v44, %v1588_v0  ;;  %v1647_v12 = vadd.f32 %v4036_v46, %v1524_v52  ;;  %v1716_v44 = vrot.slane %v1678_v14, 1  ;;  %v1862_v0 = vld [vmem:[#allocation7 + $0x60] sm:$0xff]  ;;  %v1892_v52 = vld [vmem:[#allocation9 + $0x68] sm:$0xff]  ;;  %v1897_v14 = vld [vmem:[#allocation9 + $0x90] sm:$0xff] }
 0x29b   :  { %1758 = vrot.lane.b32.xlu0 %v4083_v43, %s2371_s5  ;;  %2096 = vmatpush.msra.mxu2 %v1873_v9 }
 0x29c   :  { %v1644_v2 = vadd.f32 %v4046_v1, %v1623_v58  ;;  %v1712_v41 = vrot.slane %v1647_v12, 1  ;;  %v1891_v58 = vld [vmem:[#allocation9 + $0x60] sm:$0xff] }
 0x29d   :  { %v1555_v5 = vpop.f32.mrf.mxu3  ;;  %v1669_v42 = vld [vmem:[#allocation4 + $0x28] sm:$0xff]  ;;  %2097 = vmatpush.msra.mxu2 %v1872_v47 }
 0x29e   :  { %1657 = vst.msk [vmem:[#allocation4 + $0x38] sm:$0xff] %vm1650_vm3, %v1644_v2  ;;  %v1590_v23 = vpop.f32.mrf.mxu0  ;;  %v1556_v56 = vadd.f32 %v1555_v5, %v1403_v48  ;;  %v1702_v53 = vrot.slane %v1669_v42, 1  ;;  %v1713_v38 = vsel %vm1134_vm2, %v1708_v6, %v1712_v41  ;;  %v1628_v40 = vpop.f32.mrf.mxu2  ;;  %v1717_v29 = vsel %vm1134_vm2, %v1712_v41, %v1716_v44  ;;  %v1859_v48 = vld [vmem:[#allocation7 + $0x48] sm:$0xff]  ;;  %v1858_v2 = vld [vmem:[#allocation7 + $0x40] sm:$0xff]  ;;  %v1857_v41 = vld [vmem:[#allocation7 + $0x38] sm:$0xff] }
 0x29f   :  { %v4094_v51 = vmax.f32 %v1645_v13, %v1713_v38  ;;  %v4135_v31 = vmax.f32 %v1647_v12, %v1717_v29  ;;  %v1860_v12 = vld [vmem:[#allocation7 + $0x50] sm:$0xff]  ;;  %v1895_v29 = vld [vmem:[#allocation9 + $0x80] sm:$0xff] }
 0x2a0   :  { %v1591_v46 = vadd.f32 %v1590_v23, %v1556_v56  ;;  %v1703_v50 = vsel %vm1134_vm2, %v1698_v18, %v1702_v53  ;;  %v1894_v18 = vld [vmem:[#allocation9 + $0x78] sm:$0xff]  ;;  %v1856_v5 = vld [vmem:[#allocation7 + $0x30] sm:$0xff]  ;;  %v1855_v23 = vld [vmem:[#allocation7 + $0x28] sm:$0xff] }
 0x2a1   :  { %v4097_v17 = vmax.f32 %v1667_v49, %v1703_v50  ;;  %v1865_v49 = vld [vmem:[#allocation7 + $0x78] sm:$0xff]  ;;  %1967 = vmatpush.msra.mxu1 %v1894_v18  ;;  %v1888_v38 = vld [vmem:[#allocation9 + $0x48] sm:$0xff]  ;;  %v1871_v50 = vld [vmem:[#allocation7 + $0xa8] sm:$0xff] }
 0x2a2   :  { %v1626_v37 = vadd.f32 %v1625_v21, %v1591_v46  ;;  %2053 = vmatpush.msra.mxu0 %v1865_v49  ;;  %v1889_v56 = vld [vmem:[#allocation9 + $0x50] sm:$0xff]  ;;  %v1903_v46 = vld [vmem:[#allocation9 + $0xc0] sm:$0xf]  ;;  %2098 = vmatpush.msra.mxu2 %v1871_v50  ;;  %v1896_v44 = vld [vmem:[#allocation9 + $0x88] sm:$0xff] }
 0x2a3   :  { %1762 = vrot.lane.b32.xlu1 %v4097_v17, %s2371_s5  ;;  %1760 = vrot.lane.b32.xlu0 %v4056_v4, %s2371_s5  ;;  %v1853_v21 = vld [vmem:[#allocation7 + $0x18] sm:$0xff] }
 0x2a4   :  { %v1646_v22 = vadd.f32 %v4046_v1, %v1626_v37  ;;  %2054 = vmatpush.msra.mxu0 %v1864_v32  ;;  %1968 = vmatpush.msra.mxu1 %v1893_v57  ;;  %v1902_v37 = vld [vmem:[#allocation9 + $0xb8] sm:$0xff] }
 0x2a5   :  { %v1558_v27 = vpop.f32.mrf.mxu3  ;;  %v1671_v54 = vld [vmem:[#allocation4 + $0x38] sm:$0xff]  ;;  %2277 = vmatpush.msk.msra.mxu3 %vm1963_vm5, %v1903_v46  ;;  %2099 = vmatpush.msra.mxu2 %v1870_v19 }
 0x2a6   :  { %1659 = vst.msk [vmem:[#allocation4 + $0x48] sm:$0xff] %vm1650_vm3, %v1646_v22  ;;  %v1593_v55 = vpop.f32.mrf.mxu0  ;;  %v1559_v16 = vadd.f32 %v1558_v27, %v1406_v45  ;;  %v1706_v26 = vrot.slane %v1671_v54, 1  ;;  %2055 = vmatpush.msra.mxu0 %v1863_v11  ;;  %1969 = vmatpush.msra.mxu1 %v1892_v52  ;;  %v1887_v45 = vld [vmem:[#allocation9 + $0x40] sm:$0xff]  ;;  %v1869_v22 = vld [vmem:[#allocation7 + $0x98] sm:$0xff]  ;;  %v1852_v27 = vld [vmem:[#allocation7 + $0x10] sm:$0xff] }
 0x2a7   :  { %2010 = vmatpush.msra.mxu3 %v1902_v37  ;;  %2100 = vmatpush.msra.mxu2 %v1869_v22 }
 0x2a8   :  { %v1594_v20 = vadd.f32 %v1593_v55, %v1559_v16  ;;  %v1707_v62 = vsel %vm1134_vm2, %v1702_v53, %v1706_v26  ;;  %2056 = vmatpush.msra.mxu0 %v1862_v0  ;;  %1970 = vmatpush.msra.mxu1 %v1891_v58  ;;  %v1854_v53 = vld [vmem:[#allocation7 + $0x20] sm:$0xff]  ;;  %v1851_v55 = vld [vmem:[#allocation7 + $0x8] sm:$0xff]  ;;  %v1868_v16 = vld [vmem:[#allocation7 + $0x90] sm:$0xff] }
 0x2a9   :  { %v4109_v28 = vmax.f32 %v1669_v42, %v1707_v62  ;;  %v1890_v42 = vld [vmem:[#allocation9 + $0x58] sm:$0xff]  ;;  %v1884_v62 = vld [vmem:[#allocation9 + $0x28] sm:$0xff]  ;;  %2101 = vmatpush.msra.mxu2 %v1868_v16 }
 0x2aa   :  { %v1629_v8 = vadd.f32 %v1628_v40, %v1594_v20  ;;  %2057 = vmatpush.msra.mxu0 %v1861_v60  ;;  %1971 = vmatpush.msra.mxu1 %v1890_v42  ;;  %v1850_v20 = vld [vmem:[#allocation7] sm:$0xff]  ;;  %v1883_v40 = vld [vmem:[#allocation9 + $0x20] sm:$0xff] }
 0x2ab   :  { %1766 = vrot.lane.b32.xlu1 %v4109_v28, %s2371_s5 }
 0x2ac   :  { %v1648_v63 = vadd.f32 %v4046_v1, %v1629_v8  ;;  %2058 = vmatpush.msra.mxu0 %v1860_v12  ;;  %1972 = vmatpush.msra.mxu1 %v1889_v56  ;;  %v1867_v8 = vld [vmem:[#allocation7 + $0x88] sm:$0xff] }
 0x2ad   :  { %v1673_v61 = vld [vmem:[#allocation4 + $0x48] sm:$0xff]  ;;  %2102 = vmatpush.msra.mxu2 %v1867_v8 }
 0x2ae   :  { %1661 = vst.msk [vmem:[#allocation4 + $0x58] sm:$0xff] %vm1650_vm3, %v1648_v63  ;;  %v1710_v15 = vrot.slane %v1673_v61, 1  ;;  %2059 = vmatpush.msra.mxu0 %v1859_v48  ;;  %1973 = vmatpush.msra.mxu1 %v1888_v38  ;;  %v1901_v63 = vld [vmem:[#allocation9 + $0xb0] sm:$0xff] }
 0x2af   :  { %2011 = vmatpush.msra.mxu3 %v1901_v63 }
 0x2b0   :  { %v1711_v34 = vsel %vm1134_vm2, %v1706_v26, %v1710_v15  ;;  %2060 = vmatpush.msra.mxu0 %v1858_v2  ;;  %1974 = vmatpush.msra.mxu1 %v1887_v45  ;;  %v1885_v26 = vld [vmem:[#allocation9 + $0x30] sm:$0xff] }
 0x2b1   :  { %v4116_v7 = vmax.f32 %v1671_v54, %v1711_v34  ;;  %v1886_v54 = vld [vmem:[#allocation9 + $0x38] sm:$0xff] }
 0x2b2   :  { %2061 = vmatpush.msra.mxu0 %v1857_v41  ;;  %1975 = vmatpush.msra.mxu1 %v1886_v54  ;;  %v1882_v34 = vld [vmem:[#allocation9 + $0x18] sm:$0xff] }
 0x2b3   :  { %1768 = vrot.lane.b32.xlu1 %v4080_v35, %s2371_s5  ;;  %1770 = vrot.lane.b32.xlu0 %v4116_v7, %s2371_s5 }
 0x2b4   :  { %2062 = vmatpush.msra.mxu0 %v1856_v5  ;;  %1976 = vmatpush.msra.mxu1 %v1885_v26 }
 0x2b5   :  { %v1675_v24 = vld [vmem:[#allocation4 + $0x58] sm:$0xff] }
 0x2b6   :  { %v1714_v13 = vrot.slane %v1675_v24, 1  ;;  %2063 = vmatpush.msra.mxu0 %v1855_v23  ;;  %1977 = vmatpush.msra.mxu1 %v1884_v62 }
 0x2b8   :  { %v1715_v1 = vsel %vm1134_vm2, %v1710_v15, %v1714_v13  ;;  %v1719_v33 = vsel %vm1134_vm2, %v1714_v13, %v1718_v3  ;;  %2064 = vmatpush.msra.mxu0 %v1854_v53  ;;  %v1900_v15 = vld [vmem:[#allocation9 + $0xa8] sm:$0xff]  ;;  %1978 = vmatpush.msra.mxu1 %v1883_v40  ;;  %v1881_v3 = vld [vmem:[#allocation9 + $0x10] sm:$0xff]  ;;  %v1898_v13 = vld [vmem:[#allocation9 + $0x98] sm:$0xff] }
 0x2b9   :  { %v4124_v36 = vmax.f32 %v1673_v61, %v1715_v1  ;;  %v4126_v6 = vmax.f32 %v1675_v24, %v1719_v33  ;;  %v1866_v61 = vld [vmem:[#allocation7 + $0x80] sm:$0xff]  ;;  %2012 = vmatpush.msra.mxu3 %v1900_v15  ;;  %v1880_v24 = vld [vmem:[#allocation9 + $0x8] sm:$0xff]  ;;  %v1879_v1 = vld [vmem:[#allocation9] sm:$0xff] }
 0x2ba   :  { %2065 = vmatpush.msra.mxu0 %v1853_v21  ;;  %2103 = vmatpush.msra.mxu2 %v1866_v61 }
 0x2bb   :  { %1774 = vrot.lane.b32.xlu2 %v4124_v36, %s2371_s5  ;;  %1778 = vrot.lane.b32.xlu1 %v4126_v6, %s2371_s5 }
 0x2bc   :  { %1772 = vrot.lane.b32.xlu0 %v4094_v51, %s2371_s5  ;;  %2066 = vmatpush.msra.mxu0 %v1852_v27 }
 0x2bd   :  { %1979 = vmatpush.msra.mxu1 %v1882_v34  ;;  %2013 = vmatpush.msra.mxu3 %v1899_v39 }
 0x2be   :  { %2067 = vmatpush.msra.mxu0 %v1851_v55 }
 0x2bf   :  { %1980 = vmatpush.msra.mxu1 %v1881_v3  ;;  %2014 = vmatpush.msra.mxu3 %v1898_v13 }
 0x2c0   :  { %2068 = vmatpush.msra.mxu0 %v1850_v20 }
 0x2c1   :  { %1981 = vmatpush.msra.mxu1 %v1880_v24  ;;  %2015 = vmatpush.msra.mxu3 %v1897_v14 }
 0x2c3   :  { %1776 = vrot.lane.b32.xlu2 %v4135_v31, %s2371_s5  ;;  %1982 = vmatpush.msra.mxu1 %v1879_v1 }
 0x2c4   :  { %2016 = vmatpush.msra.mxu3 %v1896_v44 }
 0x2c6   :  { %2017 = vmatpush.msra.mxu3 %v1895_v29 }
 0x2db   :  { %v1757_v33 = vpop.permute.xlu2 %1756 }
 0x2eb   :  { %v1765_v49 = vpop.permute.xlu2 %1764 }
 0x30d   :  { %v1759_v32 = vpop.permute.xlu0 %1758 }
 0x30e   :  { %v1781_v25 = vsel %vm1780_vm6, %v1757_v33, %v1759_v32  ;;  %v1800_v11 = vmax.f32 %v4083_v43, %v1759_v32 }
 0x30f   :  { %v1799_v18 = vmax.f32 %v4044_v10, %v1781_v25 }
 0x310   :  { %v1812_v57 = vmax.f32 %v1800_v11, 0.0 }
 0x311   :  { %v1811_v59 = vmax.f32 %v1799_v18, 0.0 }
 0x312   :  { %1825 = vst.msk [vmem:[#allocation5 + $0x8] sm:$0xff] %vm1824_vm4, %v1812_v57  ;;  %v1877_v57 = vld [vmem:[#allocation5 + $0x60] sm:$0x3] }
 0x313   :  { %1823 = vst [vmem:[#allocation5] sm:$0xff] %v1811_v59  ;;  %2069 = vmatmul.f32.vlgmr.msra.gmra.mxu0 %v1811_v59 }
 0x315   :  { %v1775_v0 = vpop.permute.xlu2 %1774  ;;  %v1763_v52 = vpop.permute.xlu1 %1762 }
 0x316   :  { %v1808_v9 = vmax.f32 %v4124_v36, %v1775_v0  ;;  %v1802_v47 = vmax.f32 %v4097_v17, %v1763_v52  ;;  %v1761_v60 = vpop.permute.xlu0 %1760 }
 0x317   :  { %v1782_v58 = vsel %vm1780_vm6, %v1761_v60, %v1763_v52 }
 0x318   :  { %v1820_v12 = vmax.f32 %v1808_v9, 0.0  ;;  %v1814_v48 = vmax.f32 %v1802_v47, 0.0  ;;  %v1801_v43 = vmax.f32 %v4056_v4, %v1782_v58  ;;  %v1878_v9 = vld [vmem:[#allocation5 + $0x68] sm:$0x3] }
 0x319   :  { %v1839_v10 = vld [vmem:[#allocation5 + $0x8] sm:$0xff]  ;;  %v1943_v60 = vrot.slane %v1878_v9, 2 }
 0x31a   :  { %1833 = vst.msk [vmem:[#allocation5 + $0x48] sm:$0xff] %vm1824_vm4, %v1820_v12  ;;  %v1813_v2 = vmax.f32 %v1801_v43, 0.0  ;;  %2285 = vmatmul.msk.f32.vlgmr.msra.gmra.mxu2 %vm1824_vm4, %v1839_v10  ;;  %v1875_v41 = vld [vmem:[#allocation5] sm:$0xfc]  ;;  %v1876_v38 = vld [vmem:[#allocation5 + $0x8] sm:$0xfc] }
 0x31b   :  { %1827 = vst.msk [vmem:[#allocation5 + $0x18] sm:$0xff] %vm1824_vm4, %v1814_v48  ;;  %v1919_v36 = vrot.slane %v1875_v41, 2  ;;  %v1922_v19 = vrot.slane %v1876_v38, 2 }
 0x31c   :  { %v1920_v5 = vrot.slane %v1813_v2, 2  ;;  %2072 = vmatmul.f32.gmra.mxu0 %v1813_v2 }
 0x31d   :  { %v1767_v17 = vpop.permute.xlu1 %1766  ;;  %v1777_v63 = vpop.permute.xlu2 %1776 }
 0x31e   :  { %v1783_v42 = vsel %vm1780_vm6, %v1765_v49, %v1767_v17  ;;  %v1804_v23 = vmax.f32 %v4109_v28, %v1767_v17  ;;  %v1921_v4 = vsel %vm1918_vm7, %v1919_v36, %v1920_v5 }
 0x31f   :  { %v1803_v56 = vmax.f32 %v4067_v30, %v1783_v42  ;;  %1983 = vmatmul.f32.vlgmr.msra.gmra.mxu1 %v1921_v4 }
 0x320   :  { %v1816_v53 = vmax.f32 %v1804_v23, 0.0 }
 0x321   :  { %v1815_v21 = vmax.f32 %v1803_v56, 0.0  ;;  %v1847_v49 = vld [vmem:[#allocation5 + $0x48] sm:$0xff] }
 0x322   :  { %1829 = vst.msk [vmem:[#allocation5 + $0x28] sm:$0xff] %vm1824_vm4, %v1816_v53  ;;  %v1841_v46 = vld [vmem:[#allocation5 + $0x18] sm:$0xff] }
 0x323   :  { %v1923_v50 = vrot.slane %v1841_v46, 2  ;;  %2286 = vmatmul.msk.f32.gmra.mxu2 %vm1824_vm4, %v1841_v46  ;;  %v1925_v37 = vrot.slane %v1815_v21, 2 }
 0x324   :  { %2075 = vmatmul.f32.gmra.mxu0 %v1815_v21 }
 0x325   :  { %v1769_v45 = vpop.permute.xlu1 %1768  ;;  %v1924_v28 = vsel %vm1918_vm7, %v1922_v19, %v1923_v50  ;;  %v1771_v22 = vpop.permute.xlu0 %1770  ;;  %v1926_v27 = vsel %vm1918_vm7, %v1920_v5, %v1925_v37 }
 0x326   :  { %2278 = vmatmul.msk.f32.vlgmr.msra.gmra.mxu3 %vm1824_vm4, %v1924_v28  ;;  %v1784_v30 = vsel %vm1780_vm6, %v1769_v45, %v1771_v22  ;;  %v1806_v54 = vmax.f32 %v4116_v7, %v1771_v22 }
 0x327   :  { %v1805_v55 = vmax.f32 %v4080_v35, %v1784_v30  ;;  %1986 = vmatmul.f32.gmra.mxu1 %v1926_v27 }
 0x328   :  { %v1818_v16 = vmax.f32 %v1806_v54, 0.0 }
 0x329   :  { %v1817_v26 = vmax.f32 %v1805_v55, 0.0  ;;  %v1843_v20 = vld [vmem:[#allocation5 + $0x28] sm:$0xff] }
 0x32a   :  { %1831 = vst.msk [vmem:[#allocation5 + $0x38] sm:$0xff] %vm1824_vm4, %v1818_v16  ;;  %v1927_v62 = vrot.slane %v1843_v20, 2  ;;  %v2140_v16 = vld [vmem:[#allocation6] sm:$0x1] }
 0x32b   :  { %2287 = vmatmul.msk.f32.gmra.mxu2 %vm1824_vm4, %v1843_v20  ;;  %v1929_v40 = vrot.slane %v1817_v26, 2  ;;  %v2372_v20 = vmov 0  }
 0x32c   :  { %v1928_v8 = vsel %vm1918_vm7, %v1923_v50, %v1927_v62  ;;  %2078 = vmatmul.f32.gmra.mxu0 %v1817_v26  ;;  %2306 = vset.pattern.permute.xlu0 %v2372_v20 }
 0x32d   :  { %v1779_v61 = vpop.permute.xlu1 %1778  ;;  %v1930_v15 = vsel %vm1918_vm7, %v1925_v37, %v1929_v40  ;;  %2143 = vperm.xlu0 %2306, %v2140_v16  }
 0x32e   :  { %v1786_v7 = vsel %vm1780_vm6, %v1777_v63, %v1779_v61  ;;  %v1810_v35 = vmax.f32 %v4126_v6, %v1779_v61  ;;  %2279 = vmatmul.msk.f32.gmra.mxu3 %vm1824_vm4, %v1928_v8  ;;  %v1773_v34 = vpop.permute.xlu0 %1772 }
 0x32f   :  { %v1809_v39 = vmax.f32 %v4135_v31, %v1786_v7  ;;  %v1785_v3 = vsel %vm1780_vm6, %v1773_v34, %v1775_v0  ;;  %1989 = vmatmul.f32.gmra.mxu1 %v1930_v15  ;;  %v1941_v0 = vrot.slane %v1877_v57, 2 }
 0x330   :  { %v1822_v24 = vmax.f32 %v1810_v35, 0.0  ;;  %v1807_v13 = vmax.f32 %v4094_v51, %v1785_v3  ;;  %v1935_v51 = vrot.slane %v1847_v49, 2 }
 0x331   :  { %v1821_v14 = vmax.f32 %v1809_v39, 0.0  ;;  %v1845_v1 = vld [vmem:[#allocation5 + $0x38] sm:$0xff] }
 0x332   :  { %1835 = vst.msk [vmem:[#allocation5 + $0x58] sm:$0xff] %vm1824_vm4, %v1822_v24  ;;  %v1819_v33 = vmax.f32 %v1807_v13, 0.0  ;;  %v1931_v44 = vrot.slane %v1845_v1, 2 }
 0x333   :  { %2288 = vmatmul.msk.f32.gmra.mxu2 %vm1824_vm4, %v1845_v1  ;;  %v1937_v32 = vrot.slane %v1821_v14, 2 }
 0x334   :  { %v1932_v6 = vsel %vm1918_vm7, %v1927_v62, %v1931_v44  ;;  %v1933_v29 = vrot.slane %v1819_v33, 2  ;;  %2081 = vmatmul.f32.gmra.mxu0 %v1819_v33  ;;  %v1936_v25 = vsel %vm1918_vm7, %v1931_v44, %v1935_v51 }
 0x335   :  { %v1942_v47 = vsel %vm1918_vm7, %v1937_v32, %v1941_v0 }
 0x336   :  { %2280 = vmatmul.msk.f32.gmra.mxu3 %vm1824_vm4, %v1932_v6  ;;  %v1934_v31 = vsel %vm1918_vm7, %v1929_v40, %v1933_v29  ;;  %v1938_v18 = vsel %vm1918_vm7, %v1933_v29, %v1937_v32  ;;  %v2307_v40 = vld [vmem:[%s4214_s8] ss:$0 sm:$0xff] }
 0x337   :  { %1992 = vmatmul.f32.gmra.mxu1 %v1934_v31 }
 0x339   :  { %v1849_v11 = vld [vmem:[#allocation5 + $0x58] sm:$0xff] }
 0x33a   :  { %v1939_v59 = vrot.slane %v1849_v11, 2 }
 0x33b   :  { %2289 = vmatmul.msk.f32.gmra.mxu2 %vm1824_vm4, %v1847_v49 }
 0x33c   :  { %2084 = vmatmul.f32.gmra.mxu0 %v1821_v14  ;;  %v1940_v52 = vsel %vm1918_vm7, %v1935_v51, %v1939_v59  ;;  %v1944_v58 = vsel %vm1918_vm7, %v1939_v59, %v1943_v60  ;;  %v2139_v59 = vld [vmem:[%s4215_s9] sm:$0x1] }
 0x33e   :  { %2281 = vmatmul.msk.f32.gmra.mxu3 %vm1824_vm4, %v1936_v25 }
 0x33f   :  { %1995 = vmatmul.f32.gmra.mxu1 %v1938_v18 }
 0x343   :  { %2290 = vmatmul.msk.f32.gmra.mxu2 %vm1824_vm4, %v1849_v11 }
 0x346   :  { %2282 = vmatmul.msk.f32.gmra.mxu3 %vm1824_vm4, %v1940_v52 }
 0x347   :  { %1998 = vmatmul.f32.gmra.mxu1 %v1942_v47 }
 0x34e   :  { %2283 = vmatmul.msk.f32.gmra.mxu3 %vm1824_vm4, %v1944_v58 }
 0x390   :  { %v2070_v48 = vpop.f32.mrf.mxu0 }
 0x399   :  { %v2073_v41 = vpop.f32.mrf.mxu0 }
 0x39c   :  { %v1984_v12 = vpop.f32.mrf.mxu1 }
 0x39d   :  { %v2105_v43 = vpop.f32.mrf.mxu2 }
 0x39f   :  { %v2144_v0 = vpop.permute.xlu0 %2143 }
 0x3a0   :  { %v2146_v52 = vperm.slane %v2144_v0, 0 }
 0x3a1   :  { %v2076_v42 = vpop.f32.mrf.mxu0 }
 0x3a4   :  { %v1987_v2 = vpop.f32.mrf.mxu1 }
 0x3a6   :  { %v2108_v36 = vpop.f32.mrf.mxu2 }
 0x3a9   :  { %v2019_v10 = vpop.f32.mrf.mxu3  ;;  %v2079_v53 = vpop.f32.mrf.mxu0 }
 0x3aa   :  { %v2020_v13 = vadd.f32 %v2019_v10, %v1984_v12 }
 0x3ac   :  { %v1990_v17 = vpop.f32.mrf.mxu1  ;;  %v2071_v6 = vadd.f32 %v2070_v48, %v2020_v13 }
 0x3ae   :  { %v2111_v23 = vpop.f32.mrf.mxu2  ;;  %v2106_v32 = vadd.f32 %v2105_v43, %v2071_v6 }
 0x3b0   :  { %v2127_v11 = vadd.f32 %v2307_v40, %v2106_v32 }
 0x3b1   :  { %v2022_v5 = vpop.f32.mrf.mxu3  ;;  %v2082_v50 = vpop.f32.mrf.mxu0 }
 0x3b2   :  { %v2023_v35 = vadd.f32 %v2022_v5, %v1987_v2  ;;  %v2133_v57 = vmax.f32 %v2127_v11, 0.0 }
 0x3b4   :  { %v1993_v56 = vpop.f32.mrf.mxu1  ;;  %v2074_v14 = vadd.f32 %v2073_v41, %v2023_v35 }
 0x3b6   :  { %v2114_v38 = vpop.f32.mrf.mxu2  ;;  %v2109_v29 = vadd.f32 %v2108_v36, %v2074_v14 }
 0x3b8   :  { %v2128_v51 = vadd.f32 %v2307_v40, %v2109_v29 }
 0x3b9   :  { %v2025_v4 = vpop.f32.mrf.mxu3  ;;  %v2085_v55 = vpop.f32.mrf.mxu0 }
 0x3ba   :  { %v2026_v8 = vadd.f32 %v2025_v4, %v1990_v17  ;;  %v2134_v18 = vmax.f32 %v2128_v51, 0.0 }
 0x3bc   :  { %v1996_v46 = vpop.f32.mrf.mxu1  ;;  %v2077_v34 = vadd.f32 %v2076_v42, %v2026_v8 }
 0x3be   :  { %v2117_v37 = vpop.f32.mrf.mxu2  ;;  %v2112_v1 = vadd.f32 %v2111_v23, %v2077_v34 }
 0x3c0   :  { %v2129_v31 = vadd.f32 %v2307_v40, %v2112_v1 }
 0x3c1   :  { %v2028_v21 = vpop.f32.mrf.mxu3 }
 0x3c2   :  { %v2029_v27 = vadd.f32 %v2028_v21, %v1993_v56  ;;  %v2135_v25 = vmax.f32 %v2129_v31, 0.0 }
 0x3c4   :  { %v1999_v28 = vpop.f32.mrf.mxu1  ;;  %v2080_v63 = vadd.f32 %v2079_v53, %v2029_v27 }
 0x3c6   :  { %v2120_v62 = vpop.f32.mrf.mxu2  ;;  %v2115_v39 = vadd.f32 %v2114_v38, %v2080_v63 }
 0x3c8   :  { %v2130_v33 = vadd.f32 %v2307_v40, %v2115_v39 }
 0x3c9   :  { %v2031_v19 = vpop.f32.mrf.mxu3 }
 0x3ca   :  { %v2032_v45 = vadd.f32 %v2031_v19, %v1996_v46  ;;  %v2136_v49 = vmax.f32 %v2130_v33, 0.0 }
 0x3cc   :  { %v2083_v30 = vadd.f32 %v2082_v50, %v2032_v45 }
 0x3ce   :  { %v2118_v61 = vadd.f32 %v2117_v37, %v2083_v30 }
 0x3d0   :  { %v2131_v3 = vadd.f32 %v2307_v40, %v2118_v61 }
 0x3d1   :  { %v2034_v22 = vpop.f32.mrf.mxu3 }
 0x3d2   :  { %v2035_v54 = vadd.f32 %v2034_v22, %v1999_v28  ;;  %v2137_v44 = vmax.f32 %v2131_v3, 0.0 }
 0x3d4   :  { %v2086_v26 = vadd.f32 %v2085_v55, %v2035_v54 }
 0x3d6   :  { %v2121_v15 = vadd.f32 %v2120_v62, %v2086_v26 }
 0x3d8   :  { %v2132_v7 = vadd.f32 %v2307_v40, %v2121_v15 }
 0x3da   :  { %v2138_v24 = vmax.f32 %v2132_v7, 0.0 }
 0x3dc   :  { %2291 = vmatpush.xpose.msk.msrb.mxu1 %vm2147_vm8, %v2138_v24 }
 0x3e0   :  { %2292 = vmatpush.xpose.msk.msrb.mxu1 %vm2147_vm8, %v2137_v44 }
 0x3e4   :  { %2293 = vmatpush.xpose.msk.msrb.mxu1 %vm2147_vm8, %v2136_v49 }
 0x3e8   :  { %2294 = vmatpush.xpose.msk.msrb.mxu1 %vm2147_vm8, %v2135_v25 }
 0x3ec   :  { %2295 = vmatpush.xpose.msk.msrb.mxu1 %vm2147_vm8, %v2134_v18 }
 0x3f0   :  { %2296 = vmatpush.xpose.msk.msrb.mxu1 %vm2147_vm8, %v2133_v57 }
 0x3f3   :  { %2297 = vmatmul.msk.f32.vlgmr.msrb.gmra.mxu1 %vm2147_vm8, %v2139_v59 }
 0x470   :  { %v2186_v9 = vpop.f32.mrf.mxu1 }
 0x471   :  { %v2187_v47 = vadd.f32 %v2186_v9, %v2146_v52 }
 0x473   :  { %v2189_v60 = vmax.f32 %v2187_v47, 0.0 }
 0x475   :  { %v2190_v58 = vsub.f32 0.0, %v2189_v60 }
 0x477   :  { %v2191_v12 = vmul.f32 1.442695, %v2190_v58 }
 0x479   :  { %2308 = vpow2.f32 %v2191_v12 }
 0x47f   :  { %v2309_v48 = vpop.eup %2308 }
 0x480   :  { %v2193_v43 = vadd.f32 1.0, %v2309_v48 }
 0x482   :  { %2310 = vrcp.f32 %v2193_v43  ;;  %v2205_v36 = vand.u32 2147483648, %v2193_v43  ;;  %v2203_v17 = vand.u32 2147483647, %v2193_v43  ;;  %vm2199_vm10 = vweird.f32 %v2193_v43 }
 0x484   :  { %v2206_v23 = vor.u32 1.1754944e-38, %v2205_v36  ;;  %vm2204_vm13 = vcmp.eq.f32.partialorder %v2203_v17, 8.507059e+37 }
 0x488   :  { %v2311_v10 = vpop.eup %2310 }
 0x489   :  { %v2195_v2 = vmul.f32 %v2311_v10, %v2193_v43  ;;  %vm2200_vm9 = vweird.f32 %v2311_v10 }
 0x48a   :  { %vm2201_vm11 = vmor %vm2199_vm10, %vm2200_vm9 }
 0x48b   :  { %v2196_v41 = vsub.f32 1.0, %v2195_v2 }
 0x48d   :  { %v2197_v5 = vmul.f32 %v2311_v10, %v2196_v41 }
 0x48f   :  { %v2198_v42 = vadd.f32 %v2311_v10, %v2197_v5 }
 0x491   :  { %v2202_v4 = vsel %vm2201_vm11, %v2311_v10, %v2198_v42 }
 0x492   :  { %v2207_v56 = vsel %vm2204_vm13, %v2206_v23, %v2202_v4 }
 0x493   :  { %2210 = vst.msk [vmem:[%s4217_s11] sm:$0x1] %vm2209_vm12, %v2207_v56 }
 0x494   :  { %2215 = vsyncpa [#allocation8], 1 }
 0x495   :  { %2216 = vsyncpa [#allocation10], 1 }

</bundles_post_ra>
